<compile_context>
chip_gen: v7x
topology: tpu7x:2x2x1
jax: 0.10.0
libtpu: 0.0.40
codegen_flags: <defaults>
</compile_context>

<pallas_src>
import functools

import jax
import jax.numpy as jnp
from jax import lax
from jax.experimental import pallas as pl
from jax.experimental.pallas import tpu as pltpu

_LANE = 128


def _round_up(n, m):
    return ((n + m - 1) // m) * m


def mlp_ce_kernel(x_ref, w1_ref, b1_ref, w2_ref, b2_ref, w3_ref, b3_ref, y_ref,
                  logits_ref, loss_ref, *, batch, num_classes, tile_b):
    # ---- MLP hot path: bf16 MXU matmuls, f32 accumulation / elementwise ----
    # x arrives as raw f32 at its real width D; the VPU cast to bf16 hides under
    # the MXU and removes a wrapper-side pad+convert pass over HBM.
    x = x_ref[...].astype(jnp.bfloat16)
    h = jnp.dot(x, w1_ref[...], preferred_element_type=jnp.float32) + b1_ref[...]
    h = jnp.maximum(h, 0.0)
    h = jnp.dot(h.astype(jnp.bfloat16), w2_ref[...],
                preferred_element_type=jnp.float32) + b2_ref[...]
    h = jnp.maximum(h, 0.0)
    logits = jnp.dot(h.astype(jnp.bfloat16), w3_ref[...],
                     preferred_element_type=jnp.float32) + b3_ref[...]

    # Lane-dense (TB, C_pad) store; the wrapper slices back to (B, C).
    logits_ref[...] = logits.astype(logits_ref.dtype)

    # ---- mean cross-entropy tail, f32 (per-tile partial sum) ----
    tb, c_pad = logits.shape
    col = lax.broadcasted_iota(jnp.int32, (tb, c_pad), 1)                 # (TB,Cp)
    # Padded class columns must not contribute to logsumexp.
    logits_m = jnp.where(col < num_classes, logits, jnp.float32(-1e30))   # (TB,Cp)
    m = jnp.max(logits_m, axis=-1, keepdims=True)                         # (TB,1)
    lse = m + jnp.log(jnp.sum(jnp.exp(logits_m - m), axis=-1,
                              keepdims=True))                             # (TB,1)
    # Select-and-reduce instead of a materialized one-hot (fewer live vregs).
    true_logit = jnp.sum(jnp.where(col == y_ref[...], logits, 0.0),
                         axis=-1, keepdims=True)                          # (TB,1)
    per_example = lse - true_logit                                        # (TB,1)

    # Mask rows of the (possibly partial) last batch tile.
    row_ids = (pl.program_id(0) * tile_b
               + lax.broadcasted_iota(jnp.int32, (tb, 1), 0))             # (TB,1)
    partial = jnp.sum(jnp.where(row_ids < batch, per_example, 0.0))       # scalar

    # Lane-dense (1,1,128) partial-loss store: partial sum in lane 0, zeros else.
    lane = lax.broadcasted_iota(jnp.int32, (1, 1, _LANE), 2)
    loss_ref[...] = jnp.where(lane == 0, partial, 0.0).astype(jnp.float32)


def init_params(key, input_dim, hidden_dims, output_dim):
    """fp32 parameters mirroring the torch MLP (Linear -> ReLU -> ... -> Linear)."""
    dims = [input_dim] + list(hidden_dims) + [output_dim]
    params = []
    for i in range(len(dims) - 1):
        key, kw, kb = jax.random.split(key, 3)
        w = 0.1 * jax.random.normal(kw, (dims[i], dims[i + 1]), jnp.float32)
        b = 0.1 * jax.random.normal(kb, (1, dims[i + 1]), jnp.float32)
        params.append((w, b))
    return params


def prepare_params(params):
    """One-time preprocessing: pad feature dims to 128 lanes, cast weights to bf16.

    Hoisted out of the per-call wrapper so every forward step launches straight
    into the kernel without re-reading/re-writing the weights in HBM.
    """
    (w1, b1), (w2, b2), (w3, b3) = params
    D, H1 = w1.shape
    H2 = w2.shape[1]
    C = w3.shape[1]
    H1_p, H2_p, C_p = (_round_up(d, _LANE) for d in (H1, H2, C))

    def pad2(a, r, c):
        return jnp.pad(a, ((0, r - a.shape[0]), (0, c - a.shape[1])))

    # The first matmul's K (= D) is left unpadded: a K=D matmul is correct and
    # cheaper than padding K to 128, and x then needs no wrapper-side pad/cast.
    return {
        'w1': pad2(w1, D, H1_p).astype(jnp.bfloat16),
        'b1': pad2(b1, 1, H1_p).astype(jnp.float32),
        'w2': pad2(w2, H1_p, H2_p).astype(jnp.bfloat16),
        'b2': pad2(b2, 1, H2_p).astype(jnp.float32),
        'w3': pad2(w3, H2_p, C_p).astype(jnp.bfloat16),
        'b3': pad2(b3, 1, C_p).astype(jnp.float32),
        'dims': (D, H1, H2, C, H1_p, H2_p, C_p),
    }


def multimodal_classifier_forward(x, y_true, prepped):
    """Returns {'loss': scalar, 'logits': (B, output_dim)} like the torch module."""
    D, H1, H2, C, H1_p, H2_p, C_p = prepped['dims']
    B = x.shape[0]
    assert x.shape[1] == D

    # Batch tiling: large tiles amortize grid-step overhead and fill the MXU on
    # v6e/v7x; for B >= 16 force at least two grid steps so the "parallel"
    # batch axis can be sharded across both v7x TensorCores.
    TB = min(512, _round_up(B, 8))
    if B >= 16:
        TB = min(TB, _round_up((B + 1) // 2, 8))
    B_p = _round_up(B, TB)
    num_tiles = B_p // TB

    x_p = jnp.pad(x.astype(jnp.float32), ((0, B_p - B), (0, 0)))
    y_p = jnp.pad(y_true.reshape(B, 1).astype(jnp.int32), ((0, B_p - B), (0, 0)))

    # ---- VMEM budget (resident weights + per-tile double buffers + scratch) ----
    w_bytes = (D * H1_p + H1_p * H2_p + H2_p * C_p) * 2          # bf16 weights
    b_bytes = (H1_p + H2_p + C_p) * 4                            # f32 biases
    tile_in_bytes = TB * D * 4 + TB * 4                          # x + y per tile
    tile_out_bytes = TB * C_p * 4 + _LANE * 4                    # logits + loss
    act_bytes = TB * (H1_p + H2_p) * 4                           # f32 activations
    ce_tmp_bytes = 3 * TB * C_p * 4                              # CE temporaries

    cost = pl.CostEstimate(
        flops=2 * B_p * (D * H1_p + H1_p * H2_p + H2_p * C_p),
        transcendentals=B_p * (C_p + 1),
        bytes_accessed=int(B_p * D * 4 + w_bytes + b_bytes
                           + B_p * C_p * 4 + B_p * 4 + num_tiles * _LANE * 4),
    )

    kernel = functools.partial(mlp_ce_kernel, batch=B, num_classes=C, tile_b=TB)

    def run(single_buffer_weights):
        if single_buffer_weights:
            # Grid-invariant blocks (constant index_map) need no second buffer;
            # halves the resident-weight VMEM footprint (matters on v7x 64 MiB).
            def wspec(shape):
                return pl.BlockSpec(shape, lambda i: (0, 0),
                                    pipeline_mode=pl.Buffered(1))
            weight_bufs = 1
        else:
            def wspec(shape):
                return pl.BlockSpec(shape, lambda i: (0, 0))
            weight_bufs = 2

        vmem_limit = int(weight_bufs * (w_bytes + b_bytes)
                         + 2 * (tile_in_bytes + tile_out_bytes)
                         + act_bytes + ce_tmp_bytes
                         + (4 << 20))           # Mosaic internal scratch slack
        vmem_limit = min(vmem_limit, 100 * 1024 * 1024)

        return pl.pallas_call(
            kernel,
            grid=(num_tiles,),
            in_specs=[
                pl.BlockSpec((TB, D), lambda i: (i, 0)),      # x   (per tile, f32)
                wspec((D, H1_p)),                             # w1  (resident)
                wspec((1, H1_p)),                             # b1
                wspec((H1_p, H2_p)),                          # w2
                wspec((1, H2_p)),                             # b2
                wspec((H2_p, C_p)),                           # w3
                wspec((1, C_p)),                              # b3
                pl.BlockSpec((TB, 1), lambda i: (i, 0)),      # y   (per tile)
            ],
            out_specs=(
                pl.BlockSpec((TB, C_p), lambda i: (i, 0)),        # logits
                pl.BlockSpec((1, 1, _LANE), lambda i: (i, 0, 0)),  # per-tile loss
            ),
            out_shape=(
                jax.ShapeDtypeStruct((B_p, C_p), jnp.float32),
                jax.ShapeDtypeStruct((num_tiles, 1, _LANE), jnp.float32),
            ),
            compiler_params=pltpu.CompilerParams(
                dimension_semantics=("parallel",),
                vmem_limit_bytes=vmem_limit,
            ),
            cost_estimate=cost,
        )(x_p, prepped['w1'], prepped['b1'], prepped['w2'], prepped['b2'],
          prepped['w3'], prepped['b3'], y_p)

    try:
        logits_p, loss_tiles = run(single_buffer_weights=True)
    except Exception:
        # Older jax / Mosaic may reject pipeline_mode; fall back to defaults.
        logits_p, loss_tiles = run(single_buffer_weights=False)

    logits = logits_p[:B, :C]
    loss = jnp.sum(loss_tiles) * (1.0 / B)
    return {'loss': loss, 'logits': logits}


if __name__ == "__main__":
    # Small shapes implied by the module: an MLP classifier over flat features.
    # B=24 exercises the multi-tile grid path (2 tiles) and last-tile masking.
    B, INPUT_DIM, HIDDEN_DIMS, OUTPUT_DIM = 24, 32, (64, 64), 16

    key = jax.random.PRNGKey(0)
    kx, ky, kp = jax.random.split(key, 3)

    x = jax.random.normal(kx, (B, INPUT_DIM), jnp.float32)
    y_true = jax.random.randint(ky, (B,), 0, OUTPUT_DIM, jnp.int32)
    params = init_params(kp, INPUT_DIM, HIDDEN_DIMS, OUTPUT_DIM)
    prepped = prepare_params(params)   # one-time weight prep (hoisted out of forward)

    out = multimodal_classifier_forward(x, y_true, prepped)
    jax.block_until_ready(out)

    # Pure-JAX reference mirroring the kernel's numerics (bf16 operands, f32 acc).
    (w1, b1), (w2, b2), (w3, b3) = params

    def lin(h, w, b):
        return jnp.dot(h.astype(jnp.bfloat16), w.astype(jnp.bfloat16),
                       preferred_element_type=jnp.float32) + b

    h = jnp.maximum(lin(x, w1, b1), 0.0)
    h = jnp.maximum(lin(h, w2, b2), 0.0)
    ref_logits = lin(h, w3, b3)
    ref_loss = jnp.mean(
        jax.nn.logsumexp(ref_logits, axis=-1)
        - jnp.take_along_axis(ref_logits, y_true[:, None], axis=-1)[:, 0]
    )

    assert jnp.allclose(out['logits'], ref_logits, atol=1e-3, rtol=1e-3), (
        jnp.max(jnp.abs(out['logits'] - ref_logits)))
    assert jnp.allclose(out['loss'], ref_loss, atol=1e-3, rtol=1e-3), (
        out['loss'], ref_loss)

    print("KERNEL_OK")
</pallas_src>

<mosaic_0001>
module attributes {stable_mosaic.version = 11 : i64} {
  func.func @mlp_ce_kernel(%arg0: i32, %arg1: memref<16x32xf32, #tpu.memory_space<vmem>>, %arg2: memref<32x128xbf16, #tpu.memory_space<vmem>>, %arg3: memref<1x128xf32, #tpu.memory_space<vmem>>, %arg4: memref<128x128xbf16, #tpu.memory_space<vmem>>, %arg5: memref<1x128xf32, #tpu.memory_space<vmem>>, %arg6: memref<128x128xbf16, #tpu.memory_space<vmem>>, %arg7: memref<1x128xf32, #tpu.memory_space<vmem>>, %arg8: memref<16x1xi32, #tpu.memory_space<vmem>>, %arg9: memref<16x128xf32, #tpu.memory_space<vmem>>, %arg10: memref<1x1x128xf32, #tpu.memory_space<vmem>>) attributes {dimension_semantics = [#tpu.dimension_semantics<parallel>], iteration_bounds = array<i64: 2>, scalar_prefetch = 0 : i64, scratch_operands = 0 : i64, tpu.core_type = #tpu.core_type<tc>, window_params = [{transform_indices = @transform_0, window_bounds = array<i64: 16, 32>}, {pipeline_mode = #tpu.pipeline_mode<synchronous>, transform_indices = @transform_1, window_bounds = array<i64: 32, 128>}, {pipeline_mode = #tpu.pipeline_mode<synchronous>, transform_indices = @transform_2, window_bounds = array<i64: 1, 128>}, {pipeline_mode = #tpu.pipeline_mode<synchronous>, transform_indices = @transform_3, window_bounds = array<i64: 128, 128>}, {pipeline_mode = #tpu.pipeline_mode<synchronous>, transform_indices = @transform_4, window_bounds = array<i64: 1, 128>}, {pipeline_mode = #tpu.pipeline_mode<synchronous>, transform_indices = @transform_5, window_bounds = array<i64: 128, 128>}, {pipeline_mode = #tpu.pipeline_mode<synchronous>, transform_indices = @transform_6, window_bounds = array<i64: 1, 128>}, {transform_indices = @transform_7, window_bounds = array<i64: 16, 1>}, {transform_indices = @transform_8, window_bounds = array<i64: 16, 128>}, {transform_indices = @transform_9, window_bounds = array<i64: 1, 1, 128>}]} {
    %c0 = arith.constant 0 : index
    %c0_0 = arith.constant 0 : index
    %0 = vector.load %arg1[%c0, %c0_0] : memref<16x32xf32, #tpu.memory_space<vmem>>, vector<16x32xf32>
    %1 = arith.truncf %0 : vector<16x32xf32> to vector<16x32xbf16>
    %c0_1 = arith.constant 0 : index
    %c0_2 = arith.constant 0 : index
    %2 = vector.load %arg2[%c0_1, %c0_2] : memref<32x128xbf16, #tpu.memory_space<vmem>>, vector<32x128xbf16>
    %cst = arith.constant dense<0.000000e+00> : vector<16x128xf32>
    %3 = tpu.matmul %1, %2, %cst {dimension_numbers = #tpu.dot_dimension_numbers<[1], [0], [0], [1], [0, 0, 1, 1], [], []>} : vector<16x32xbf16>, vector<32x128xbf16>, vector<16x128xf32> -> vector<16x128xf32>
    %c0_3 = arith.constant 0 : index
    %c0_4 = arith.constant 0 : index
    %4 = vector.load %arg3[%c0_3, %c0_4] : memref<1x128xf32, #tpu.memory_space<vmem>>, vector<1x128xf32>
    %5 = vector.broadcast %4 : vector<1x128xf32> to vector<16x128xf32>
    %6 = arith.addf %3, %5 : vector<16x128xf32>
    %cst_5 = arith.constant 0.000000e+00 : f32
    %7 = vector.broadcast %cst_5 : f32 to vector<16x128xf32>
    %8 = arith.maximumf %6, %7 : vector<16x128xf32>
    %9 = arith.truncf %8 : vector<16x128xf32> to vector<16x128xbf16>
    %c0_6 = arith.constant 0 : index
    %c0_7 = arith.constant 0 : index
    %10 = vector.load %arg4[%c0_6, %c0_7] : memref<128x128xbf16, #tpu.memory_space<vmem>>, vector<128x128xbf16>
    %cst_8 = arith.constant dense<0.000000e+00> : vector<16x128xf32>
    %11 = tpu.matmul %9, %10, %cst_8 {dimension_numbers = #tpu.dot_dimension_numbers<[1], [0], [0], [1], [0, 0, 1, 1], [], []>} : vector<16x128xbf16>, vector<128x128xbf16>, vector<16x128xf32> -> vector<16x128xf32>
    %c0_9 = arith.constant 0 : index
    %c0_10 = arith.constant 0 : index
    %12 = vector.load %arg5[%c0_9, %c0_10] : memref<1x128xf32, #tpu.memory_space<vmem>>, vector<1x128xf32>
    %13 = vector.broadcast %12 : vector<1x128xf32> to vector<16x128xf32>
    %14 = arith.addf %11, %13 : vector<16x128xf32>
    %cst_11 = arith.constant 0.000000e+00 : f32
    %15 = vector.broadcast %cst_11 : f32 to vector<16x128xf32>
    %16 = arith.maximumf %14, %15 : vector<16x128xf32>
    %17 = arith.truncf %16 : vector<16x128xf32> to vector<16x128xbf16>
    %c0_12 = arith.constant 0 : index
    %c0_13 = arith.constant 0 : index
    %18 = vector.load %arg6[%c0_12, %c0_13] : memref<128x128xbf16, #tpu.memory_space<vmem>>, vector<128x128xbf16>
    %cst_14 = arith.constant dense<0.000000e+00> : vector<16x128xf32>
    %19 = tpu.matmul %17, %18, %cst_14 {dimension_numbers = #tpu.dot_dimension_numbers<[1], [0], [0], [1], [0, 0, 1, 1], [], []>} : vector<16x128xbf16>, vector<128x128xbf16>, vector<16x128xf32> -> vector<16x128xf32>
    %c0_15 = arith.constant 0 : index
    %c0_16 = arith.constant 0 : index
    %20 = vector.load %arg7[%c0_15, %c0_16] : memref<1x128xf32, #tpu.memory_space<vmem>>, vector<1x128xf32>
    %21 = vector.broadcast %20 : vector<1x128xf32> to vector<16x128xf32>
    %22 = arith.addf %19, %21 : vector<16x128xf32>
    %c0_17 = arith.constant 0 : index
    %c0_18 = arith.constant 0 : index
    %23 = vector.load %arg9[%c0_17, %c0_18] : memref<16x128xf32, #tpu.memory_space<vmem>>, vector<16x128xf32>
    tpu.vector_store %arg9[%c0_17, %c0_18], %22 {strides = array<i32>} : memref<16x128xf32, #tpu.memory_space<vmem>>, vector<16x128xf32>,
    %24 = tpu.iota {dimensions = array<i32: 1>} : vector<16x128xi32>
    %c16_i32 = arith.constant 16 : i32
    %25 = vector.broadcast %c16_i32 : i32 to vector<16x128xi32>
    %26 = arith.cmpi slt, %24, %25 : vector<16x128xi32>
    %cst_19 = arith.constant -1.000000e+30 : f32
    %27 = vector.broadcast %cst_19 : f32 to vector<16x128xf32>
    %28 = arith.select %26, %22, %27 : vector<16x128xi1>, vector<16x128xf32>
    %cst_20 = arith.constant dense<0xFF800000> : vector<16xf32>
    %29 = vector.multi_reduction <maximumf>, %28, %cst_20 [1] : vector<16x128xf32> to vector<16xf32>
    %30 = vector.shape_cast %29 : vector<16xf32> to vector<16x1xf32>
    %31 = vector.broadcast %30 : vector<16x1xf32> to vector<16x128xf32>
    %32 = arith.subf %28, %31 : vector<16x128xf32>
    %33 = math.exp %32 : vector<16x128xf32>
    %cst_21 = arith.constant dense<0.000000e+00> : vector<16xf32>
    %34 = vector.multi_reduction <add>, %33, %cst_21 [1] : vector<16x128xf32> to vector<16xf32>
    %35 = vector.shape_cast %34 : vector<16xf32> to vector<16x1xf32>
    %36 = math.log %35 : vector<16x1xf32>
    %37 = arith.addf %30, %36 : vector<16x1xf32>
    %c0_22 = arith.constant 0 : index
    %c0_23 = arith.constant 0 : index
    %38 = vector.load %arg8[%c0_22, %c0_23] : memref<16x1xi32, #tpu.memory_space<vmem>>, vector<16x1xi32>
    %39 = vector.broadcast %38 : vector<16x1xi32> to vector<16x128xi32>
    %40 = arith.cmpi eq, %24, %39 : vector<16x128xi32>
    %cst_24 = arith.constant 0.000000e+00 : f32
    %41 = vector.broadcast %cst_24 : f32 to vector<16x128xf32>
    %42 = arith.select %40, %22, %41 : vector<16x128xi1>, vector<16x128xf32>
    %cst_25 = arith.constant dense<0.000000e+00> : vector<16xf32>
    %43 = vector.multi_reduction <add>, %42, %cst_25 [1] : vector<16x128xf32> to vector<16xf32>
    %44 = vector.shape_cast %43 : vector<16xf32> to vector<16x1xf32>
    %45 = arith.subf %37, %44 : vector<16x1xf32>
    %c16_i32_26 = arith.constant 16 : i32
    %46 = arith.muli %arg0, %c16_i32_26 : i32
    %47 = tpu.iota {dimensions = array<i32: 0>} : vector<16x1xi32>
    %48 = vector.broadcast %46 : i32 to vector<16x1xi32>
    %49 = arith.addi %48, %47 : vector<16x1xi32>
    %c24_i32 = arith.constant 24 : i32
    %50 = vector.broadcast %c24_i32 : i32 to vector<16x1xi32>
    %51 = arith.cmpi slt, %49, %50 : vector<16x1xi32>
    %cst_27 = arith.constant 0.000000e+00 : f32
    %52 = vector.broadcast %cst_27 : f32 to vector<16x1xf32>
    %53 = arith.select %51, %45, %52 : vector<16x1xi1>, vector<16x1xf32>
    %54 = vector.shape_cast %53 : vector<16x1xf32> to vector<1x16x1xf32>
    %cst_28 = arith.constant dense<0.000000e+00> : vector<1xf32>
    %55 = vector.multi_reduction <add>, %54, %cst_28 [1, 2] : vector<1x16x1xf32> to vector<1xf32>
    %56 = vector.shape_cast %55 : vector<1xf32> to vector<1x1x1xf32>
    %57 = vector.extract %56[0, 0, 0] : f32 from vector<1x1x1xf32>
    %58 = tpu.iota {dimensions = array<i32: 2>} : vector<1x1x128xi32>
    %c0_i32 = arith.constant 0 : i32
    %59 = vector.broadcast %c0_i32 : i32 to vector<1x1x128xi32>
    %60 = arith.cmpi eq, %58, %59 : vector<1x1x128xi32>
    %cst_29 = arith.constant 0.000000e+00 : f32
    %61 = vector.broadcast %57 : f32 to vector<1x1x128xf32>
    %62 = vector.broadcast %cst_29 : f32 to vector<1x1x128xf32>
    %63 = arith.select %60, %61, %62 : vector<1x1x128xi1>, vector<1x1x128xf32>
    %c0_30 = arith.constant 0 : index
    %c0_31 = arith.constant 0 : index
    %c0_32 = arith.constant 0 : index
    %64 = vector.load %arg10[%c0_30, %c0_31, %c0_32] : memref<1x1x128xf32, #tpu.memory_space<vmem>>, vector<1x1x128xf32>
    tpu.vector_store %arg10[%c0_30, %c0_31, %c0_32], %63 {strides = array<i32>} : memref<1x1x128xf32, #tpu.memory_space<vmem>>, vector<1x1x128xf32>,
    return
  }
  func.func @transform_0(%arg0: i32) -> (i32, i32) {
    %c0_i32 = arith.constant 0 : i32
    %c0_i32_0 = arith.constant 0 : i32
    return %arg0, %c0_i32 : i32, i32
  }
  func.func @transform_1(%arg0: i32) -> (i32, i32) {
    %c0_i32 = arith.constant 0 : i32
    %c0_i32_0 = arith.constant 0 : i32
    %c0_i32_1 = arith.constant 0 : i32
    return %c0_i32, %c0_i32_0 : i32, i32
  }
  func.func @transform_2(%arg0: i32) -> (i32, i32) {
    %c0_i32 = arith.constant 0 : i32
    %c0_i32_0 = arith.constant 0 : i32
    %c0_i32_1 = arith.constant 0 : i32
    return %c0_i32, %c0_i32_0 : i32, i32
  }
  func.func @transform_3(%arg0: i32) -> (i32, i32) {
    %c0_i32 = arith.constant 0 : i32
    %c0_i32_0 = arith.constant 0 : i32
    %c0_i32_1 = arith.constant 0 : i32
    return %c0_i32, %c0_i32_0 : i32, i32
  }
  func.func @transform_4(%arg0: i32) -> (i32, i32) {
    %c0_i32 = arith.constant 0 : i32
    %c0_i32_0 = arith.constant 0 : i32
    %c0_i32_1 = arith.constant 0 : i32
    return %c0_i32, %c0_i32_0 : i32, i32
  }
  func.func @transform_5(%arg0: i32) -> (i32, i32) {
    %c0_i32 = arith.constant 0 : i32
    %c0_i32_0 = arith.constant 0 : i32
    %c0_i32_1 = arith.constant 0 : i32
    return %c0_i32, %c0_i32_0 : i32, i32
  }
  func.func @transform_6(%arg0: i32) -> (i32, i32) {
    %c0_i32 = arith.constant 0 : i32
    %c0_i32_0 = arith.constant 0 : i32
    %c0_i32_1 = arith.constant 0 : i32
    return %c0_i32, %c0_i32_0 : i32, i32
  }
  func.func @transform_7(%arg0: i32) -> (i32, i32) {
    %c0_i32 = arith.constant 0 : i32
    %c0_i32_0 = arith.constant 0 : i32
    return %arg0, %c0_i32 : i32, i32
  }
  func.func @transform_8(%arg0: i32) -> (i32, i32) {
    %c0_i32 = arith.constant 0 : i32
    %c0_i32_0 = arith.constant 0 : i32
    return %arg0, %c0_i32 : i32, i32
  }
  func.func @transform_9(%arg0: i32) -> (i32, i32, i32) {
    %c0_i32 = arith.constant 0 : i32
    %c0_i32_0 = arith.constant 0 : i32
    %c0_i32_1 = arith.constant 0 : i32
    return %arg0, %c0_i32, %c0_i32_0 : i32, i32, i32
  }
}

module attributes {stable_mosaic.version = 11 : i64} {
  func.func @mlp_ce_kernel(%arg0: i32, %arg1: memref<16x32xf32, #tpu.memory_space<vmem>>, %arg2: memref<32x128xbf16, #tpu.memory_space<vmem>>, %arg3: memref<1x128xf32, #tpu.memory_space<vmem>>, %arg4: memref<128x128xbf16, #tpu.memory_space<vmem>>, %arg5: memref<1x128xf32, #tpu.memory_space<vmem>>, %arg6: memref<128x128xbf16, #tpu.memory_space<vmem>>, %arg7: memref<1x128xf32, #tpu.memory_space<vmem>>, %arg8: memref<16x1xi32, #tpu.memory_space<vmem>>, %arg9: memref<16x128xf32, #tpu.memory_space<vmem>>, %arg10: memref<1x1x128xf32, #tpu.memory_space<vmem>>) attributes {dimension_semantics = [#tpu.dimension_semantics<parallel>], iteration_bounds = array<i64: 2>, scalar_prefetch = 0 : i64, scratch_operands = 0 : i64, tpu.core_type = #tpu.core_type<tc>, window_params = [{transform_indices = @transform_0, window_bounds = array<i64: 16, 32>}, {pipeline_mode = #tpu.pipeline_mode<synchronous>, transform_indices = @transform_1, window_bounds = array<i64: 32, 128>}, {pipeline_mode = #tpu.pipeline_mode<synchronous>, transform_indices = @transform_2, window_bounds = array<i64: 1, 128>}, {pipeline_mode = #tpu.pipeline_mode<synchronous>, transform_indices = @transform_3, window_bounds = array<i64: 128, 128>}, {pipeline_mode = #tpu.pipeline_mode<synchronous>, transform_indices = @transform_4, window_bounds = array<i64: 1, 128>}, {pipeline_mode = #tpu.pipeline_mode<synchronous>, transform_indices = @transform_5, window_bounds = array<i64: 128, 128>}, {pipeline_mode = #tpu.pipeline_mode<synchronous>, transform_indices = @transform_6, window_bounds = array<i64: 1, 128>}, {transform_indices = @transform_7, window_bounds = array<i64: 16, 1>}, {transform_indices = @transform_8, window_bounds = array<i64: 16, 128>}, {transform_indices = @transform_9, window_bounds = array<i64: 1, 1, 128>}]} {
    %c0 = arith.constant 0 : index
    %c0_0 = arith.constant 0 : index
    %0 = vector.load %arg1[%c0, %c0_0] : memref<16x32xf32, #tpu.memory_space<vmem>>, vector<16x32xf32>
    %1 = arith.truncf %0 : vector<16x32xf32> to vector<16x32xbf16>
    %c0_1 = arith.constant 0 : index
    %c0_2 = arith.constant 0 : index
    %2 = vector.load %arg2[%c0_1, %c0_2] : memref<32x128xbf16, #tpu.memory_space<vmem>>, vector<32x128xbf16>
    %cst = arith.constant dense<0.000000e+00> : vector<16x128xf32>
    %3 = tpu.matmul %1, %2, %cst {dimension_numbers = #tpu.dot_dimension_numbers<[1], [0], [0], [1], [0, 0, 1, 1], [], []>} : vector<16x32xbf16>, vector<32x128xbf16>, vector<16x128xf32> -> vector<16x128xf32>
    %c0_3 = arith.constant 0 : index
    %c0_4 = arith.constant 0 : index
    %4 = vector.load %arg3[%c0_3, %c0_4] : memref<1x128xf32, #tpu.memory_space<vmem>>, vector<1x128xf32>
    %5 = vector.broadcast %4 : vector<1x128xf32> to vector<16x128xf32>
    %6 = arith.addf %3, %5 : vector<16x128xf32>
    %cst_5 = arith.constant 0.000000e+00 : f32
    %7 = vector.broadcast %cst_5 : f32 to vector<16x128xf32>
    %8 = arith.maximumf %6, %7 : vector<16x128xf32>
    %9 = arith.truncf %8 : vector<16x128xf32> to vector<16x128xbf16>
    %c0_6 = arith.constant 0 : index
    %c0_7 = arith.constant 0 : index
    %10 = vector.load %arg4[%c0_6, %c0_7] : memref<128x128xbf16, #tpu.memory_space<vmem>>, vector<128x128xbf16>
    %cst_8 = arith.constant dense<0.000000e+00> : vector<16x128xf32>
    %11 = tpu.matmul %9, %10, %cst_8 {dimension_numbers = #tpu.dot_dimension_numbers<[1], [0], [0], [1], [0, 0, 1, 1], [], []>} : vector<16x128xbf16>, vector<128x128xbf16>, vector<16x128xf32> -> vector<16x128xf32>
    %c0_9 = arith.constant 0 : index
    %c0_10 = arith.constant 0 : index
    %12 = vector.load %arg5[%c0_9, %c0_10] : memref<1x128xf32, #tpu.memory_space<vmem>>, vector<1x128xf32>
    %13 = vector.broadcast %12 : vector<1x128xf32> to vector<16x128xf32>
    %14 = arith.addf %11, %13 : vector<16x128xf32>
    %cst_11 = arith.constant 0.000000e+00 : f32
    %15 = vector.broadcast %cst_11 : f32 to vector<16x128xf32>
    %16 = arith.maximumf %14, %15 : vector<16x128xf32>
    %17 = arith.truncf %16 : vector<16x128xf32> to vector<16x128xbf16>
    %c0_12 = arith.constant 0 : index
    %c0_13 = arith.constant 0 : index
    %18 = vector.load %arg6[%c0_12, %c0_13] : memref<128x128xbf16, #tpu.memory_space<vmem>>, vector<128x128xbf16>
    %cst_14 = arith.constant dense<0.000000e+00> : vector<16x128xf32>
    %19 = tpu.matmul %17, %18, %cst_14 {dimension_numbers = #tpu.dot_dimension_numbers<[1], [0], [0], [1], [0, 0, 1, 1], [], []>} : vector<16x128xbf16>, vector<128x128xbf16>, vector<16x128xf32> -> vector<16x128xf32>
    %c0_15 = arith.constant 0 : index
    %c0_16 = arith.constant 0 : index
    %20 = vector.load %arg7[%c0_15, %c0_16] : memref<1x128xf32, #tpu.memory_space<vmem>>, vector<1x128xf32>
    %21 = vector.broadcast %20 : vector<1x128xf32> to vector<16x128xf32>
    %22 = arith.addf %19, %21 : vector<16x128xf32>
    %c0_17 = arith.constant 0 : index
    %c0_18 = arith.constant 0 : index
    %23 = vector.load %arg9[%c0_17, %c0_18] : memref<16x128xf32, #tpu.memory_space<vmem>>, vector<16x128xf32>
    tpu.vector_store %arg9[%c0_17, %c0_18], %22 {strides = array<i32>} : memref<16x128xf32, #tpu.memory_space<vmem>>, vector<16x128xf32>,
    %24 = tpu.iota {dimensions = array<i32: 1>} : vector<16x128xi32>
    %c16_i32 = arith.constant 16 : i32
    %25 = vector.broadcast %c16_i32 : i32 to vector<16x128xi32>
    %26 = arith.cmpi slt, %24, %25 : vector<16x128xi32>
    %cst_19 = arith.constant -1.000000e+30 : f32
    %27 = vector.broadcast %cst_19 : f32 to vector<16x128xf32>
    %28 = arith.select %26, %22, %27 : vector<16x128xi1>, vector<16x128xf32>
    %cst_20 = arith.constant dense<0xFF800000> : vector<16xf32>
    %29 = vector.multi_reduction <maximumf>, %28, %cst_20 [1] : vector<16x128xf32> to vector<16xf32>
    %30 = vector.shape_cast %29 : vector<16xf32> to vector<16x1xf32>
    %31 = vector.broadcast %30 : vector<16x1xf32> to vector<16x128xf32>
    %32 = arith.subf %28, %31 : vector<16x128xf32>
    %33 = math.exp %32 : vector<16x128xf32>
    %cst_21 = arith.constant dense<0.000000e+00> : vector<16xf32>
    %34 = vector.multi_reduction <add>, %33, %cst_21 [1] : vector<16x128xf32> to vector<16xf32>
    %35 = vector.shape_cast %34 : vector<16xf32> to vector<16x1xf32>
    %36 = math.log %35 : vector<16x1xf32>
    %37 = arith.addf %30, %36 : vector<16x1xf32>
    %c0_22 = arith.constant 0 : index
    %c0_23 = arith.constant 0 : index
    %38 = vector.load %arg8[%c0_22, %c0_23] : memref<16x1xi32, #tpu.memory_space<vmem>>, vector<16x1xi32>
    %39 = vector.broadcast %38 : vector<16x1xi32> to vector<16x128xi32>
    %40 = arith.cmpi eq, %24, %39 : vector<16x128xi32>
    %cst_24 = arith.constant 0.000000e+00 : f32
    %41 = vector.broadcast %cst_24 : f32 to vector<16x128xf32>
    %42 = arith.select %40, %22, %41 : vector<16x128xi1>, vector<16x128xf32>
    %cst_25 = arith.constant dense<0.000000e+00> : vector<16xf32>
    %43 = vector.multi_reduction <add>, %42, %cst_25 [1] : vector<16x128xf32> to vector<16xf32>
    %44 = vector.shape_cast %43 : vector<16xf32> to vector<16x1xf32>
    %45 = arith.subf %37, %44 : vector<16x1xf32>
    %c16_i32_26 = arith.constant 16 : i32
    %46 = arith.muli %arg0, %c16_i32_26 : i32
    %47 = tpu.iota {dimensions = array<i32: 0>} : vector<16x1xi32>
    %48 = vector.broadcast %46 : i32 to vector<16x1xi32>
    %49 = arith.addi %48, %47 : vector<16x1xi32>
    %c24_i32 = arith.constant 24 : i32
    %50 = vector.broadcast %c24_i32 : i32 to vector<16x1xi32>
    %51 = arith.cmpi slt, %49, %50 : vector<16x1xi32>
    %cst_27 = arith.constant 0.000000e+00 : f32
    %52 = vector.broadcast %cst_27 : f32 to vector<16x1xf32>
    %53 = arith.select %51, %45, %52 : vector<16x1xi1>, vector<16x1xf32>
    %54 = vector.shape_cast %53 : vector<16x1xf32> to vector<1x16x1xf32>
    %cst_28 = arith.constant dense<0.000000e+00> : vector<1xf32>
    %55 = vector.multi_reduction <add>, %54, %cst_28 [1, 2] : vector<1x16x1xf32> to vector<1xf32>
    %56 = vector.shape_cast %55 : vector<1xf32> to vector<1x1x1xf32>
    %57 = vector.extract %56[0, 0, 0] : f32 from vector<1x1x1xf32>
    %58 = tpu.iota {dimensions = array<i32: 2>} : vector<1x1x128xi32>
    %c0_i32 = arith.constant 0 : i32
    %59 = vector.broadcast %c0_i32 : i32 to vector<1x1x128xi32>
    %60 = arith.cmpi eq, %58, %59 : vector<1x1x128xi32>
    %cst_29 = arith.constant 0.000000e+00 : f32
    %61 = vector.broadcast %57 : f32 to vector<1x1x128xf32>
    %62 = vector.broadcast %cst_29 : f32 to vector<1x1x128xf32>
    %63 = arith.select %60, %61, %62 : vector<1x1x128xi1>, vector<1x1x128xf32>
    %c0_30 = arith.constant 0 : index
    %c0_31 = arith.constant 0 : index
    %c0_32 = arith.constant 0 : index
    %64 = vector.load %arg10[%c0_30, %c0_31, %c0_32] : memref<1x1x128xf32, #tpu.memory_space<vmem>>, vector<1x1x128xf32>
    tpu.vector_store %arg10[%c0_30, %c0_31, %c0_32], %63 {strides = array<i32>} : memref<1x1x128xf32, #tpu.memory_space<vmem>>, vector<1x1x128xf32>,
    return
  }
  func.func @transform_0(%arg0: i32) -> (i32, i32) {
    %c0_i32 = arith.constant 0 : i32
    %c0_i32_0 = arith.constant 0 : i32
    return %arg0, %c0_i32 : i32, i32
  }
  func.func @transform_1(%arg0: i32) -> (i32, i32) {
    %c0_i32 = arith.constant 0 : i32
    %c0_i32_0 = arith.constant 0 : i32
    %c0_i32_1 = arith.constant 0 : i32
    return %c0_i32, %c0_i32_0 : i32, i32
  }
  func.func @transform_2(%arg0: i32) -> (i32, i32) {
    %c0_i32 = arith.constant 0 : i32
    %c0_i32_0 = arith.constant 0 : i32
    %c0_i32_1 = arith.constant 0 : i32
    return %c0_i32, %c0_i32_0 : i32, i32
  }
  func.func @transform_3(%arg0: i32) -> (i32, i32) {
    %c0_i32 = arith.constant 0 : i32
    %c0_i32_0 = arith.constant 0 : i32
    %c0_i32_1 = arith.constant 0 : i32
    return %c0_i32, %c0_i32_0 : i32, i32
  }
  func.func @transform_4(%arg0: i32) -> (i32, i32) {
    %c0_i32 = arith.constant 0 : i32
    %c0_i32_0 = arith.constant 0 : i32
    %c0_i32_1 = arith.constant 0 : i32
    return %c0_i32, %c0_i32_0 : i32, i32
  }
  func.func @transform_5(%arg0: i32) -> (i32, i32) {
    %c0_i32 = arith.constant 0 : i32
    %c0_i32_0 = arith.constant 0 : i32
    %c0_i32_1 = arith.constant 0 : i32
    return %c0_i32, %c0_i32_0 : i32, i32
  }
  func.func @transform_6(%arg0: i32) -> (i32, i32) {
    %c0_i32 = arith.constant 0 : i32
    %c0_i32_0 = arith.constant 0 : i32
    %c0_i32_1 = arith.constant 0 : i32
    return %c0_i32, %c0_i32_0 : i32, i32
  }
  func.func @transform_7(%arg0: i32) -> (i32, i32) {
    %c0_i32 = arith.constant 0 : i32
    %c0_i32_0 = arith.constant 0 : i32
    return %arg0, %c0_i32 : i32, i32
  }
  func.func @transform_8(%arg0: i32) -> (i32, i32) {
    %c0_i32 = arith.constant 0 : i32
    %c0_i32_0 = arith.constant 0 : i32
    return %arg0, %c0_i32 : i32, i32
  }
  func.func @transform_9(%arg0: i32) -> (i32, i32, i32) {
    %c0_i32 = arith.constant 0 : i32
    %c0_i32_0 = arith.constant 0 : i32
    %c0_i32_1 = arith.constant 0 : i32
    return %arg0, %c0_i32, %c0_i32_0 : i32, i32, i32
  }
}

</mosaic_0001>

<bundles_post_ra>
// kernel: tpu_custom_call.1
= control target key start
LH: loop header
LB: loop body
LE: loop exit
PB: predicated region body
PF: predicated region fallthrough
CT: control target
= control target key end

     0   :  { %15 = vsyncpa [#allocation3], 0  ;;  %s1728_s0 = inlined_call_operand.vmem [shape: f32[32,32], index: 0, kind: input, shape index: {}]   ;;  %s1729_s1 = inlined_call_operand.hbm [shape: bf16[32,128], index: 1, kind: input, shape index: {}]   ;;  %s1730_s2 = inlined_call_operand.vmem [shape: f32[1,128], index: 2, kind: input, shape index: {}]   ;;  %s1731_s3 = inlined_call_operand.hbm [shape: bf16[128,128], index: 3, kind: input, shape index: {}]   ;;  %s1732_s4 = inlined_call_operand.vmem [shape: f32[1,128], index: 4, kind: input, shape index: {}]   ;;  %s1733_s5 = inlined_call_operand.hbm [shape: bf16[128,128], index: 5, kind: input, shape index: {}]   ;;  %s1734_s6 = inlined_call_operand.vmem [shape: f32[1,128], index: 6, kind: input, shape index: {}]   ;;  %s1735_s7 = inlined_call_operand.vmem [shape: s32[32,1], index: 7, kind: input, shape index: {}]   ;;  %s1736_s8 = inlined_call_operand.hbm [shape: f32[32,128], index: 8, kind: output, shape index: {0}]   ;;  %s1737_s9 = inlined_call_operand.hbm [shape: f32[2,1,128], index: 9, kind: output, shape index: {1}]  }
   0x1   :  { %16 = vsyncpa [#allocation6], 0 }
   0x2   :  { %17 = vsyncpa [#allocation4], 0 }
   0x3   :  { %19 = vsyncpa [#allocation4 + $0x1], 0 }
   0x4   :  { %20 = vsyncpa [#allocation10], 0 }
   0x5   :  { %22 = vsyncpa [#allocation10 + $0x1], 0  ;;  %s1425_s30 = smov 0   ;;  %s1427_s10 = smov 0  }
   0x6   :  { %s1429_s11 = smov 0   ;;  %s1431_s12 = smov 0  }
   0x7 LB: > { %1746 = sst [smem:[#allocation15_spill]] %s1349_s30  ;;  %s1446_s13 = sadd.s32 4294967295, %s1361_s12   ;;  %s1361_s12 = sphi %s1431_s12, %s1765_s12   ;;  %s1357_s11 = sphi %s1429_s11, %s1767_s11   ;;  %s1353_s10 = sphi %s1427_s10, %s1769_s10   ;;  %s1349_s30 = sphi %s1425_s30, %s1768_s30  }
   0x8   : > { %1747 = sst [smem:[#allocation16_spill]] %s1357_s11  ;;  %s949_s14 = sadd.s32 4294967294, %s1361_s12  }
   0x9   : > { %s1450_s15 = sadd.s32 1, %s1361_s12   ;;  %s213_s16 = sadd.s32 1, %s1357_s11 }
   0xa   : > { %1748 = sst [smem:[#allocation17_spill]] %s1450_s15  ;;  %s210_s17 = ssub.s32 %s1361_s12, %s1450_s15 }
   0xb   : > { %p223_p0 = scmp.ne.s32.totalorder %s1357_s11, %s1353_s10  ;;  %p211_p1 = scmp.eq.s32.totalorder %s210_s17, 0 }
   0xc   : > { %p224_p2 = scmp.eq.s32.totalorder %s1446_s13, 1  ;;  %p229_p3 = scmp.ne.s32.totalorder %s1353_s10, %s1349_s30 }
   0xd   : > { %p230_p4 = scmp.eq.s32.totalorder %s949_s14, 1  ;;  %p950_p7 = scmp.ge.s32.totalorder %s1361_s12, 1 }
   0xe   : > { %s1461_s18 = scalar_select %p211_p1, %s1357_s11, %s213_s16  }
   0xf   : > { %p1463_p5 = por %p224_p2, %p223_p0  ;;  %p1467_p6 = por %p230_p4, %p229_p3 }
  0x10   : > { %1749 = sst [smem:[#allocation18_spill]] %s1461_s18  ;;  %p263_p8 = scmp.lt.s32.totalorder %s1361_s12, 3 }
  0x11   : > { %s1750_s19 = scalar_select %p1463_p5, 1, 0 }
  0x12   : > { %s1751_s20 = scalar_select %p1467_p6, 1, 0 }
  0x13   : > { %p1738_p9 = scmp.eq.s32.totalorder %s1446_s13, 0  ;;  %p1474_p10 = pnand %p950_p7, %p263_p8 }
  0x14   : > { %1752 = sst [smem:[#allocation19_spill]] %s1751_s20  ;;  %s1363_s22 = smov [#allocation5]  }
  0x15   : > { %s1753_s21 = scalar_select %p1474_p10, 1, 0 }
  0x16   : > { %p1081_p11 = pneg %p1474_p10  ;;  %s291_s23 = sshll.u32 %s1363_s22, 4  ;;  %s1480_s23 = int_to_ptr.vmem [resolvable:$true] %s291_s23 }
  0x17   : > { %s1364_s25 = smov [#allocation2]   ;;  %s1365_s27 = smov [#allocation7]  }
  0x18   : > { %p1484_p12 = pnand %p1738_p9, %p1081_p11  ;;  %s275_s26 = sshll.u32 %s1364_s25, 4  ;;  %s1488_s26 = int_to_ptr.vmem [resolvable:$true] %s275_s26 }
  0x19   : > { %s1490_s28 = sshll.u32 %s1365_s27, 4  ;;  %s1175_s16 = scalar_lea.hbm %s1731_s3, 1024  ;;  %s308_s28 = int_to_ptr.vmem [resolvable:$true] %s1490_s28 }
  0x1a   : > { %p1176_p13 = scmp.ne.s32.totalorder %s1731_s3, %s1175_s16  ;;  %p1500_p0 = pneg %p1484_p12 }
  0x1b   : > { %p1182_p3 = scmp.lt.u32.totalorder %s1175_s16, %s1731_s3 }
  0x1c   : > { %p1178_p1 = pnand %p1500_p0, %p1176_p13 }
  0x1e   : > { %p1179_p2 = pneg %p1178_p1 }
  0x20   : > { %p1184_p4 = pnand %p1182_p3, %p1179_p2 }
  0x22   : > { %1187 = shalt.err (!%p1184_p4)
}
  0x23   : > { %s1188_s29 = scalar_lea.vmem %s1480_s23, 1024  ;;  %p1196_p9 = scmp.lt.s32.totalorder %s1480_s23, %s1480_s23 }
  0x24   : > { %p1189_p7 = scmp.ne.s32.totalorder %s1480_s23, %s1188_s29  ;;  %p1197_p6 = scmp.lt.s32.totalorder %s1188_s29, %s1188_s29 }
  0x26   : > { %p1191_p8 = pnand %p1189_p7, %p1500_p0  ;;  %p1198_p13 = por %p1197_p6, %p1196_p9 }
  0x28   : > { %p1192_p11 = pneg %p1191_p8 }
  0x2a   : > { %p1199_p1 = pnand %p1198_p13, %p1192_p11 }
  0x2c   : > { %1202 = shalt.err (!%p1199_p1)
}
  0x2d   : > { %s1366_s14 = smov 64   ;;  %s1367_s16 = smov 4  }
  0x2e   : > { %1087 = dma.hbm_to_vmem [thread:$0]  (!%p1484_p12), %s1731_s3, 1024, %s1480_s23, [#allocation6], %s1366_s14, %s1366_s14, %s1367_s16  }
  0x2f   : > { %s1203_s29 = scalar_lea.hbm %s1729_s1, 256 }
  0x30   : > { %p1204_p6 = scmp.ne.s32.totalorder %s1729_s1, %s1203_s29  ;;  %p1210_p3 = scmp.lt.u32.totalorder %s1203_s29, %s1729_s1 }
  0x32   : > { %p1206_p9 = pnand %p1204_p6, %p1500_p0 }
  0x34   : > { %p1207_p2 = pneg %p1206_p9 }
  0x36   : > { %p1212_p4 = pnand %p1210_p3, %p1207_p2 }
  0x38   : > { %1215 = shalt.err (!%p1212_p4)
}
  0x39   : > { %s1216_s23 = scalar_lea.vmem %s1488_s26, 256  ;;  %p1224_p13 = scmp.lt.s32.totalorder %s1488_s26, %s1488_s26 }
  0x3a   : > { %p1217_p7 = scmp.ne.s32.totalorder %s1488_s26, %s1216_s23  ;;  %p1225_p1 = scmp.lt.s32.totalorder %s1216_s23, %s1216_s23 }
  0x3c   : > { %p1219_p8 = pnand %p1217_p7, %p1500_p0  ;;  %p1226_p6 = por %p1225_p1, %p1224_p13 }
  0x3e   : > { %p1220_p11 = pneg %p1219_p8 }
  0x40   : > { %p1227_p9 = pnand %p1226_p6, %p1220_p11 }
  0x42   : > { %1230 = shalt.err (!%p1227_p9)
}
  0x43   : > { %1084 = dma.hbm_to_vmem [thread:$0]  (!%p1484_p12), %s1729_s1, 256, %s1488_s26, [#allocation3], %s1366_s14, %s1366_s14, %s1367_s16  }
  0x44   : > { %s1231_s17 = scalar_lea.hbm %s1733_s5, 1024 }
  0x45   : > { %p1232_p2 = scmp.ne.s32.totalorder %s1733_s5, %s1231_s17  ;;  %p1238_p7 = scmp.lt.u32.totalorder %s1231_s17, %s1733_s5 }
  0x47   : > { %p1234_p3 = pnand %p1232_p2, %p1500_p0 }
  0x49   : > { %p1235_p4 = pneg %p1234_p3 }
  0x4b   : > { %p1240_p8 = pnand %p1238_p7, %p1235_p4 }
  0x4d   : > { %1243 = shalt.err (!%p1240_p8)
}
  0x4e   : > { %s1244_s23 = scalar_lea.vmem %s308_s28, 1024  ;;  %p1252_p6 = scmp.lt.s32.totalorder %s308_s28, %s308_s28 }
  0x4f   : > { %p1245_p11 = scmp.ne.s32.totalorder %s308_s28, %s1244_s23  ;;  %p1253_p9 = scmp.lt.s32.totalorder %s1244_s23, %s1244_s23 }
  0x51   : > { %p1247_p13 = pnand %p1245_p11, %p1500_p0  ;;  %p1254_p5 = por %p1253_p9, %p1252_p6 }
  0x53   : > { %p1248_p1 = pneg %p1247_p13 }
  0x55   : > { %p1255_p10 = pnand %p1254_p5, %p1248_p1 }
  0x57   : > { %1258 = shalt.err (!%p1255_p10)
}
  0x58   : > { %1090 = dma.hbm_to_vmem [thread:$0]  (!%p1484_p12), %s1733_s5, 1024, %s308_s28, [#allocation6], %s1366_s14, %s1366_s14, %s1367_s16  }
  0x59   : > { %p1756_p2 = scmp.ne.s32.totalorder %s1753_s21, 0 }
  0x5a   : > { %p1757_p0 = scmp.eq.s32.totalorder (!%p1756_p2), %s1446_s13, 0 }
  0x5b   : > { %344 = sbr.rel (%p1756_p2) target bundleno = 1311 (0x51f), region = 52 }
  0x62   : > { %1332 = dma.done.wait (%p1757_p0), [#allocation3], 256   ;;  %p1758_p3 = pmov %p1757_p0 }
  0x63   : > { %p1759_p5 = pmov %p1757_p0 }
  0x64   : > { %1334 = vsyncadd (%p1758_p3), [#allocation3], 4294967040 }
  0x65   : > { %1336 = dma.done.wait (%p1759_p5), [#allocation6], 2048   ;;  %p1760_p10 = pmov %p1757_p0 }
  0x66   : > { %s960_s18 = sshll.u32 %s1446_s13, 1  ;;  %v1368_v0 = vmov 0.0   ;;  %vm1369_vm0 = vmmov 0   ;;  %v1149_v1 = vld [vmem:[#allocation2] sm:$0xff]   ;;  %v1150_v2 = vld [vmem:[#allocation2 + $0x8] sm:$0xff]   ;;  %v1151_v5 = vld [vmem:[#allocation5] sm:$0xff]   ;;  %v714_v45 = vlaneseq }
  0x67   : > { %1338 = vsyncadd (%p1760_p10), [#allocation6], 4294965248  ;;  %1015 = vmatprep.subr.bf16.mxu0 %v1368_v0  ;;  %1019 = vmatprep.mubr.msk.bf16.mxu0 %vm1369_vm0, %v1368_v0  ;;  %p398_p12 = scmp.lt.s32.totalorder %s960_s18, 3  ;;  %v1152_v7 = vld [vmem:[#allocation5 + $0x8] sm:$0xff]   ;;  %vm437_vm1 = vcmask 261120   ;;  %v1153_v8 = vld [vmem:[#allocation5 + $0x10] sm:$0xff]  }
  0x68   : > { %1023 = vmatprep.subr.bf16.mxu1 %v1368_v0  ;;  %1039 = vmatprep.mubr.msk.bf16.mxu1 %vm1369_vm0, %v1368_v0  ;;  %v1154_v9 = vld [vmem:[#allocation5 + $0x18] sm:$0xff]   ;;  %v1155_v10 = vld [vmem:[#allocation5 + $0x20] sm:$0xff]   ;;  %v1156_v11 = vld [vmem:[#allocation5 + $0x28] sm:$0xff]   ;;  %v1370_v32 = vmov 0   ;;  %s1627_s27 = sand.u32 1, %s1353_s10   ;;  %v1629_v46 = vand.u32 127, %v714_v45 }
  0x69   : > { %s1771_s18 = smov (!%p398_p12, %s960_s18), 3  ;;  %1016 = vmatpush3.bf16.msra.mxu0 %v1149_v1  ;;  %1024 = vmatpush3.bf16.msra.mxu1 %v1151_v5  ;;  %v1157_v12 = vld [vmem:[#allocation5 + $0x30] sm:$0xff]   ;;  %v1158_v13 = vld [vmem:[#allocation5 + $0x38] sm:$0xff]   ;;  %v1159_v14 = vld [vmem:[#allocation7] sm:$0xff]   ;;  %s959_s29 = sshll.u32 %s1627_s27, 4  ;;  %vm768_vm7 = vcmask 7168  }
  0x6a   : > { %s961_s21 = sshll.u32 %s1771_s18, 3  ;;  %1017 = vmatprep.subr.bf16.mxu0 %v1368_v0  ;;  %1025 = vmatprep.subr.bf16.mxu1 %v1368_v0  ;;  %v1160_v15 = vld [vmem:[#allocation7 + $0x8] sm:$0xff]   ;;  %v1161_v16 = vld [vmem:[#allocation7 + $0x10] sm:$0xff]   ;;  %v1162_v17 = vld [vmem:[#allocation7 + $0x18] sm:$0xff]   ;;  %vm716_vm2 = vcmp.lt.s32.totalorder %v1629_v46, 16  ;;  %s1636_s30 = scalar_lea.vmem [#allocation8], %s959_s29 }
  0x6b   : > { %s401_s14 = scalar_lea.vmem %s1728_s0, %s961_s21  ;;  %v1163_v18 = vld [vmem:[#allocation7 + $0x20] sm:$0xff]   ;;  %v1164_v19 = vld [vmem:[#allocation7 + $0x28] sm:$0xff]   ;;  %v964_v20 = vld [vmem:[%s1730_s2] ss:$0 sm:$0xff]  ;;  %s407_s17 = scalar_lea.vmem %s1735_s7, %s961_s21  ;;  %1147 = vset.pattern.permute.xlu1 %v1370_v32  ;;  %1148 = vset.pattern.permute.xlu0 %v1370_v32 }
  0x6c   : > { %v411_v3 = vld [vmem:[%s401_s14] sm:$0xff]  ;;  %v412_v4 = vld [vmem:[%s401_s14 + $0x8] sm:$0xff]  ;;  %s986_s18 = sshll.u32 %s1446_s13, 4  ;;  %s803_s21 = sshll.u32 %s1636_s30, 4  ;;  %s1646_s21 = int_to_ptr.vmem [resolvable:$true] %s803_s21 }
  0x6d   : > { %v413_v6 = vpack.c.bf16 %v412_v4, %v411_v3  ;;  %1018 = vmatpush3.bf16.msra.mxu0 %v1150_v2  ;;  %1026 = vmatpush3.bf16.msra.mxu1 %v1152_v7  ;;  %v1165_v30 = vld [vmem:[#allocation7 + $0x30] sm:$0xff]   ;;  %v1166_v31 = vld [vmem:[#allocation7 + $0x38] sm:$0xff]   ;;  %v761_v7 = vstv %s986_s18  ;;  %s993_s24 = sshll.u32 %s1446_s13, 8  ;;  %s786_s11 = scalar_lea.sflag [#allocation4], %s1627_s27 }
  0x6e   : > { %1043 = vmatprep.subr.bf16.mxu0 %v1368_v0  ;;  %1027 = vmatprep.subr.bf16.mxu1 %v1368_v0  ;;  %v739_v33 = vld [vmem:[%s407_s17] sm:$0xff]  ;;  %v740_v34 = vld [vmem:[%s407_s17 + $0x8] sm:$0xff]  ;;  %s1652_s16 = scalar_lea.hbm %s1736_s8, %s993_s24  ;;  %s1259_s15 = scalar_lea.vmem %s1646_s21, 256 }
  0x6f   : > { %742 = vperm.xlu1 %1147, %v739_v33   ;;  %v968_v35 = vld [vmem:[%s1732_s4] ss:$0 sm:$0xff]  ;;  %p1260_p4 = scmp.ne.s32.totalorder %s1646_s21, %s1259_s15  ;;  %p1761_p7 = scmp.ne.s32.totalorder %s1750_s19, 0 }
  0x70   : > { %1020 = vmatmul.mubr.msk.bf16.vlgmr.msra.gmra.mrb[0].mxu0 %vm437_vm1, %v413_v6  ;;  %v977_v47 = vld [vmem:[%s1734_s6] ss:$0 sm:$0xff]  ;;  %v759_v6 = vshrl.u32 %v714_v45, 7  ;;  %s1371_s20 = smov [#allocation8]  }
  0x71   : > { %1059 = vmatprep.mubr.msk.bf16.mxu0 %vm1369_vm0, %v1368_v0  ;;  %1028 = vmatpush3.bf16.msra.mxu1 %v1153_v8  ;;  %p1261_p8 = pnand %p1260_p4, %p1761_p7  ;;  %s1263_s17 = sshll.u32 %s1371_s20, 4  ;;  %s1264_s17 = int_to_ptr.vmem [resolvable:$false] %s1263_s17 }
  0x72   : > { %1029 = vmatprep.subr.bf16.mxu1 %v1368_v0  ;;  %1044 = vmatpush3.bf16.msra.mxu0 %v1159_v14  ;;  %s1265_s22 = scalar_lea.vmem %s1264_s17, 512  ;;  %p1266_p13 = scmp.lt.s32.totalorder %s1646_s21, %s1264_s17 }
  0x73   : > { %1045 = vmatprep.subr.bf16.mxu0 %v1368_v0  ;;  %745 = vperm.xlu1 %1147, %v740_v34   ;;  %p1262_p11 = pneg %p1261_p8  ;;  %p1267_p1 = scmp.lt.s32.totalorder %s1265_s22, %s1259_s15 }
  0x75   : > { %1030 = vmatpush3.bf16.msra.mxu1 %v1154_v9  ;;  %v760_v9 = vadd.s32 8, %v759_v6  ;;  %p1268_p6 = por %p1267_p1, %p1266_p13 }
  0x76   : > { %1031 = vmatprep.subr.bf16.mxu1 %v1368_v0  ;;  %1046 = vmatpush3.bf16.msra.mxu0 %v1160_v15 }
  0x77   : > { %1047 = vmatprep.subr.bf16.mxu0 %v1368_v0  ;;  %v763_v15 = vadd.s32 %v761_v7, %v760_v9  ;;  %p1269_p9 = pnand %p1268_p6, %p1262_p11 }
  0x79   : > { %1032 = vmatpush3.bf16.msra.mxu1 %v1155_v10  ;;  %vm765_vm6 = vcmp.lt.s32.totalorder %v763_v15, 24 }
  0x7a   : > { %1033 = vmatprep.subr.bf16.mxu1 %v1368_v0  ;;  %1048 = vmatpush3.bf16.msra.mxu0 %v1161_v16 }
  0x7b   : > { %1049 = vmatprep.subr.bf16.mxu0 %v1368_v0 }
  0x7d   : > { %1034 = vmatpush3.bf16.msra.mxu1 %v1156_v11  ;;  %v762_v11 = vadd.s32 %v761_v7, %v759_v6 }
  0x7e   : > { %1035 = vmatprep.subr.bf16.mxu1 %v1368_v0  ;;  %1050 = vmatpush3.bf16.msra.mxu0 %v1162_v17 }
  0x7f   : > { %1051 = vmatprep.subr.bf16.mxu0 %v1368_v0  ;;  %vm764_vm5 = vcmp.lt.s32.totalorder %v762_v11, 24 }
  0x81   : > { %1036 = vmatpush3.bf16.msra.mxu1 %v1157_v12 }
  0x82   : > { %1037 = vmatprep.subr.bf16.mxu1 %v1368_v0  ;;  %1052 = vmatpush3.bf16.msra.mxu0 %v1163_v18 }
  0x83   : > { %1053 = vmatprep.subr.bf16.mxu0 %v1368_v0 }
  0x85   : > { %1038 = vmatpush3.bf16.msra.mxu1 %v1158_v13 }
  0x86   : > { %1054 = vmatpush3.bf16.msra.mxu0 %v1164_v19 }
  0x87   : > { %1055 = vmatprep.subr.bf16.mxu0 %v1368_v0 }
  0x8a   : > { %1056 = vmatpush3.bf16.msra.mxu0 %v1165_v30 }
  0x8b   : > { %1057 = vmatprep.subr.bf16.mxu0 %v1368_v0 }
  0x8e   : > { %1058 = vmatpush3.bf16.msra.mxu0 %v1166_v31 }
  0xee   : > { %v743_v62 = vpop.permute.xlu1 %742 }
  0xef   : > { %vm747_vm3 = vcmp.eq.s32.totalorder %v1629_v46, %v743_v62 }
  0xf2   : > { %v746_v0 = vpop.permute.xlu1 %745 }
  0xf3   : > { %vm748_vm4 = vcmp.eq.s32.totalorder %v1629_v46, %v746_v0 }
 0x143   : > { %v475_v21 = vpop.f32.mrb[0].mxu0 }
 0x144   : > { %v476_v22 = vadd.f32 %v964_v20, %v475_v21  ;;  %v1021_v23 = vpop.f32.mrb[1].mxu0 }
 0x145   : > { %v478_v24 = vpop.f32.mrb[2].mxu0 }
 0x146   : > { %v479_v25 = vadd.f32 %v964_v20, %v478_v24  ;;  %v1022_v26 = vpop.f32.mrb[3].mxu0  ;;  %v482_v27 = vmax.f32 %v476_v22, 0.0 }
 0x148   : > { %v483_v28 = vmax.f32 %v479_v25, 0.0 }
 0x14a   : > { %v484_v29 = vpack.c.bf16 %v483_v28, %v482_v27 }
 0x14c   : > { %1040 = vmatmul.mubr.bf16.vlgmr.msra.gmra.mrb[0].mxu1 %v484_v29 }
 0x21f   : > { %v590_v36 = vpop.f32.mrb[0].mxu1 }
 0x220   : > { %v591_v37 = vadd.f32 %v968_v35, %v590_v36  ;;  %v1041_v38 = vpop.f32.mrb[1].mxu1 }
 0x221   : > { %v593_v39 = vpop.f32.mrb[2].mxu1 }
 0x222   : > { %v594_v40 = vadd.f32 %v968_v35, %v593_v39  ;;  %v1042_v41 = vpop.f32.mrb[3].mxu1  ;;  %v597_v42 = vmax.f32 %v591_v37, 0.0 }
 0x224   : > { %v598_v43 = vmax.f32 %v594_v40, 0.0 }
 0x226   : > { %v599_v44 = vpack.c.bf16 %v598_v43, %v597_v42 }
 0x228   : > { %1060 = vmatmul.mubr.bf16.vlgmr.msra.gmra.mrb[4].mxu0 %v599_v44 }
 0x2fb   : > { %v705_v48 = vpop.f32.mrb[4].mxu0 }
 0x2fc   : > { %v706_v49 = vadd.f32 %v977_v47, %v705_v48  ;;  %v1061_v50 = vpop.f32.mrb[5].mxu0 }
 0x2fd   : > { %v708_v51 = vpop.f32.mrb[6].mxu0 }
 0x2fe   : > { %712 = vst [vmem:[%s1636_s30] sm:$0xff] %v706_v49  ;;  %v709_v52 = vadd.f32 %v977_v47, %v708_v51  ;;  %v1062_v53 = vpop.f32.mrb[7].mxu0  ;;  %v717_v54 = vsel %vm716_vm2, %v706_v49, -1e+30  ;;  %v749_v2 = vsel %vm747_vm3, %v706_v49, 0.0 }
 0x2ff   : > { %719 = vmax.xlane.f32.xlu0 %v717_v54 }
 0x300   : > { %713 = vst [vmem:[%s1636_s30 + $0x8] sm:$0xff] %v709_v52  ;;  %v718_v55 = vsel %vm716_vm2, %v709_v52, -1e+30  ;;  %v750_v3 = vsel %vm748_vm4, %v709_v52, 0.0 }
 0x303   : > { %721 = vmax.xlane.f32.xlu0 %v718_v55 }
 0x38c   : > { %v720_v56 = vpop.xlane.xlu0 %719 }
 0x38d   : > { %v723_v57 = vsub.f32 %v717_v54, %v720_v56 }
 0x38f   : > { %v725_v58 = vmul.f32 1.442695, %v723_v57 }
 0x390   : > { %v722_v59 = vpop.xlane.xlu0 %721 }
 0x391   : > { %1167 = vpow2.f32 %v725_v58  ;;  %v724_v60 = vsub.f32 %v718_v55, %v722_v59 }
 0x393   : > { %v727_v61 = vmul.f32 1.442695, %v724_v60 }
 0x395   : > { %1169 = vpow2.f32 %v727_v61 }
 0x39b   : > { %v1168_v63 = vpop.eup %1167 }
 0x39c   : > { %729 = vadd.xlane.f32.xlu0 %v1168_v63 }
 0x39f   : > { %v1170_v1 = vpop.eup %1169 }
 0x3a0   : > { %751 = vadd.xlane.f32.xlu0 %v749_v2  ;;  %731 = vadd.xlane.f32.xlu1 %v1170_v1 }
 0x3a4   : > { %753 = vadd.xlane.f32.xlu0 %v750_v3 }
 0x429   : > { %v730_v4 = vpop.xlane.xlu0 %729 }
 0x42a   : > { %1171 = vlog2.f32 %v730_v4 }
 0x42d   : > { %v732_v5 = vpop.xlane.xlu1 %731  ;;  %v752_v12 = vpop.xlane.xlu0 %751 }
 0x42e   : > { %1173 = vlog2.f32 %v732_v5 }
 0x431   : > { %v754_v19 = vpop.xlane.xlu0 %753 }
 0x434   : > { %v1172_v8 = vpop.eup %1171 }
 0x435   : > { %v734_v10 = vmul.f32 0.6931472, %v1172_v8 }
 0x437   : > { %v737_v13 = vadd.f32 %v734_v10, %v720_v56 }
 0x438   : > { %v1174_v14 = vpop.eup %1173 }
 0x439   : > { %v736_v16 = vmul.f32 0.6931472, %v1174_v14  ;;  %v755_v17 = vsub.f32 %v737_v13, %v752_v12 }
 0x43b   : > { %v738_v18 = vadd.f32 %v736_v16, %v722_v59  ;;  %v766_v20 = vsel %vm764_vm5, %v755_v17, 0.0 }
 0x43c   : > { %v769_v23 = vsel %vm768_vm7, %v766_v20, 0.0 }
 0x43d   : > { %v756_v21 = vsub.f32 %v738_v18, %v754_v19 }
 0x43f   : > { %v767_v22 = vsel %vm765_vm6, %v756_v21, 0.0 }
 0x440   : > { %v770_v24 = vsel %vm768_vm7, %v767_v22, 0.0 }
 0x441   : > { %v771_v25 = vadd.f32 %v770_v24, %v769_v23 }
 0x443   : > { %772 = vadd.xlane.f32.xlu0 %v771_v25 }
 0x444   : > { %1272 = shalt.err (!%p1269_p9)
}
 0x445   : > { %s1273_s25 = scalar_lea.hbm %s1652_s16, 256  ;;  %s1277_s26 = scalar_lea.hbm %s1736_s8, 512 }
 0x446   : > { %p1274_p2 = scmp.ne.s32.totalorder %s1652_s16, %s1273_s25  ;;  %p1278_p5 = scmp.lt.u32.totalorder %s1652_s16, %s1736_s8 }
 0x447   : > { %p1279_p10 = scmp.lt.u32.totalorder %s1277_s26, %s1273_s25  ;;  %p1281_p4 = scmp.lt.u32.totalorder %s1273_s25, %s1652_s16 }
 0x448   : > { %p1275_p0 = pnand %p1274_p2, %p1761_p7 }
 0x449   : > { %p1280_p12 = por %p1279_p10, %p1278_p5 }
 0x44a   : > { %p1276_p3 = pneg %p1275_p0 }
 0x44b   : > { %p1282_p8 = por %p1281_p4, %p1280_p12 }
 0x44d   : > { %p1283_p11 = pnand %p1282_p8, %p1276_p3 }
 0x44f   : > { %1286 = shalt.err (!%p1283_p11)
}
 0x450   : > { %s1372_s28 = smov 128   ;;  %s1373_s14 = smov 8   ;;  %vm781_vm8 = vcmp.eq.s32.totalorder %v1629_v46, 0 }
 0x451   : > { %1077 = dma.vmem_to_hbm [thread:$0]  (%p1761_p7), %s1646_s21, 256, %s1652_s16, %s786_s11, %s1372_s28, %s1372_s28, %s1373_s14  }
 0x452   : > { %s396_s15 = scalar_lea.vmem [#allocation9], %s1627_s27  ;;  %s1685_s21 = scalar_lea.hbm %s1737_s9, %s986_s18 }
 0x453   : > { %s819_s20 = sshll.u32 %s396_s15, 4  ;;  %s791_s16 = scalar_lea.sflag [#allocation10], %s1627_s27  ;;  %s1687_s20 = int_to_ptr.vmem [resolvable:$true] %s819_s20 }
 0x454   : > { %s1287_s11 = scalar_lea.vmem %s1687_s20, 16  ;;  %s1374_s29 = smov [#allocation9]  }
 0x455   : > { %p1288_p13 = scmp.ne.s32.totalorder %s1687_s20, %s1287_s11  ;;  %s1291_s13 = sshll.u32 %s1374_s29, 4  ;;  %s1292_s13 = int_to_ptr.vmem [resolvable:$false] %s1291_s13 }
 0x456   : > { %s1293_s23 = scalar_lea.vmem %s1292_s13, 32  ;;  %p1294_p9 = scmp.lt.s32.totalorder %s1687_s20, %s1292_s13 }
 0x457   : > { %p1289_p1 = pnand %p1288_p13, %p1761_p7  ;;  %p1295_p2 = scmp.lt.s32.totalorder %s1293_s23, %s1287_s11 }
 0x459   : > { %p1290_p6 = pneg %p1289_p1  ;;  %p1296_p0 = por %p1295_p2, %p1294_p9 }
 0x45b   : > { %p1297_p3 = pnand %p1296_p0, %p1290_p6 }
 0x4d0   : > { %v773_v26 = vpop.xlane.xlu0 %772 }
 0x4d1   : > { %v774_v27 = vrot.slane %v773_v26, 4 }
 0x4d3   : > { %v775_v28 = vadd.f32 %v774_v27, %v773_v26 }
 0x4d5   : > { %v776_v29 = vrot.slane %v775_v28, 2 }
 0x4d7   : > { %v777_v30 = vadd.f32 %v776_v29, %v775_v28 }
 0x4d9   : > { %v778_v31 = vrot.slane %v777_v30, 1 }
 0x4db   : > { %v779_v32 = vadd.f32 %v778_v31, %v777_v30 }
 0x4dd   : > { %1063 = vpush %v779_v32 }
 0x50e   : > { %s1064_s17 = spop %1063 }
 0x50f   : > { %v782_v33 = vstv %s1064_s17 }
 0x510   : > { %v783_v34 = vsel %vm781_vm8, %v782_v33, 0.0 }
 0x511   : > { %784 = vst [vmem:[%s396_s15] sm:$0x1] %v783_v34 }
 0x512   : > { %1300 = shalt.err (!%p1297_p3)
}
 0x513   : > { %s1301_s27 = scalar_lea.hbm %s1685_s21, 16  ;;  %s1305_s30 = scalar_lea.hbm %s1737_s9, 32 }
 0x514   : > { %p1302_p5 = scmp.ne.s32.totalorder %s1685_s21, %s1301_s27  ;;  %p1306_p4 = scmp.lt.u32.totalorder %s1685_s21, %s1737_s9 }
 0x515   : > { %p1307_p8 = scmp.lt.u32.totalorder %s1305_s30, %s1301_s27  ;;  %p1309_p13 = scmp.lt.u32.totalorder %s1301_s27, %s1685_s21 }
 0x516   : > { %p1303_p10 = pnand %p1302_p5, %p1761_p7 }
 0x517   : > { %p1308_p11 = por %p1307_p8, %p1306_p4 }
 0x518   : > { %p1304_p12 = pneg %p1303_p10 }
 0x519   : > { %p1310_p1 = por %p1309_p13, %p1308_p11 }
 0x51b   : > { %p1311_p6 = pnand %p1310_p1, %p1304_p12 }
 0x51d   : > { %1314 = shalt.err (!%p1311_p6)
}
 0x51e   : > { %1078 = dma.vmem_to_hbm [thread:$0]  (%p1761_p7), %s1687_s20, 16, %s1685_s21, %s791_s16  }
 0x51f PF: > { %s1762_s14 = sld [smem:[#allocation15_spill]]  ;;  %s1763_s15 = sld [smem:[#allocation19_spill]] }
 0x520   : > { %p1104_p9 = scmp.ge.s32.totalorder %s1361_s12, 2 }
 0x525   : > { %s831_s17 = sand.u32 1, %s1762_s14   ;;  %p1764_p2 = scmp.ne.s32.totalorder %s1763_s15, 0 }
 0x526   : > { %s832_s22 = scalar_lea.sflag [#allocation4], %s831_s17 }
 0x527   : > { %p1092_p0 = pnand %p1104_p9, %p1764_p2 }
 0x529   : > { %1340 = dma.done.wait (!%p1092_p0), %s832_s22, 256  }
 0x52a   : > { %1342 = vsyncadd (!%p1092_p0), %s832_s22, 4294967040  ;;  %s841_s25 = scalar_lea.sflag [#allocation10], %s831_s17 }
 0x52b   : > { %1344 = dma.done.wait (!%p1092_p0), %s841_s25, 16  }
 0x52c   : > { %1346 = vsyncadd (!%p1092_p0), %s841_s25, 4294967280  ;;  %s1765_s12 = sld [smem:[#allocation17_spill]]  ;;  %s1766_s19 = sld [smem:[#allocation16_spill]] }
 0x52d   : > { %s1767_s11 = sld [smem:[#allocation18_spill]]  ;;  %s1768_s30 = smov %s1353_s10 }
 0x532   : > { %p25_p7 = scmp.ge.s32.totalorder %s1765_s12, 4   ;;  %s1769_s10 = smov %s1766_s19 }
 0x534   :  { %27 = sbr.rel (!%p25_p7) target bundleno = 7 (0x7), region = 120 }
 0x53b   :  { %845 = vsyncpa [#allocation3], 1 }
 0x53c   :  { %847 = vsyncpa [#allocation3 + $0x1], 1 }
 0x53d   :  { %848 = vsyncpa [#allocation6], 1 }
 0x53e   :  { %849 = vsyncpa [#allocation4], 1 }
 0x53f   :  { %851 = vsyncpa [#allocation4 + $0x1], 1 }
 0x540   :  { %852 = vsyncpa [#allocation10], 1 }
 0x541   :  { %854 = vsyncpa [#allocation10 + $0x1], 1 }

// kernel: tpu_custom_call.1
= control target key start
LH: loop header
LB: loop body
LE: loop exit
PB: predicated region body
PF: predicated region fallthrough
CT: control target
= control target key end

     0   :  { %15 = vsyncpa [#allocation3], 0  ;;  %s1728_s0 = inlined_call_operand.vmem [shape: f32[32,32], index: 0, kind: input, shape index: {}]   ;;  %s1729_s1 = inlined_call_operand.hbm [shape: bf16[32,128], index: 1, kind: input, shape index: {}]   ;;  %s1730_s2 = inlined_call_operand.vmem [shape: f32[1,128], index: 2, kind: input, shape index: {}]   ;;  %s1731_s3 = inlined_call_operand.hbm [shape: bf16[128,128], index: 3, kind: input, shape index: {}]   ;;  %s1732_s4 = inlined_call_operand.vmem [shape: f32[1,128], index: 4, kind: input, shape index: {}]   ;;  %s1733_s5 = inlined_call_operand.hbm [shape: bf16[128,128], index: 5, kind: input, shape index: {}]   ;;  %s1734_s6 = inlined_call_operand.vmem [shape: f32[1,128], index: 6, kind: input, shape index: {}]   ;;  %s1735_s7 = inlined_call_operand.vmem [shape: s32[32,1], index: 7, kind: input, shape index: {}]   ;;  %s1736_s8 = inlined_call_operand.hbm [shape: f32[32,128], index: 8, kind: output, shape index: {0}]   ;;  %s1737_s9 = inlined_call_operand.hbm [shape: f32[2,1,128], index: 9, kind: output, shape index: {1}]  }
   0x1   :  { %16 = vsyncpa [#allocation6], 0 }
   0x2   :  { %17 = vsyncpa [#allocation4], 0 }
   0x3   :  { %19 = vsyncpa [#allocation4 + $0x1], 0 }
   0x4   :  { %20 = vsyncpa [#allocation10], 0 }
   0x5   :  { %22 = vsyncpa [#allocation10 + $0x1], 0  ;;  %s1425_s30 = smov 0   ;;  %s1427_s10 = smov 0  }
   0x6   :  { %s1429_s11 = smov 0   ;;  %s1431_s12 = smov 0  }
   0x7 LB: > { %1746 = sst [smem:[#allocation15_spill]] %s1349_s30  ;;  %s1446_s13 = sadd.s32 4294967295, %s1361_s12   ;;  %s1361_s12 = sphi %s1431_s12, %s1765_s12   ;;  %s1357_s11 = sphi %s1429_s11, %s1767_s11   ;;  %s1353_s10 = sphi %s1427_s10, %s1769_s10   ;;  %s1349_s30 = sphi %s1425_s30, %s1768_s30  }
   0x8   : > { %1747 = sst [smem:[#allocation16_spill]] %s1357_s11  ;;  %s949_s14 = sadd.s32 4294967294, %s1361_s12  }
   0x9   : > { %s1450_s15 = sadd.s32 1, %s1361_s12   ;;  %s213_s16 = sadd.s32 1, %s1357_s11 }
   0xa   : > { %1748 = sst [smem:[#allocation17_spill]] %s1450_s15  ;;  %s210_s17 = ssub.s32 %s1361_s12, %s1450_s15 }
   0xb   : > { %p223_p0 = scmp.ne.s32.totalorder %s1357_s11, %s1353_s10  ;;  %p211_p1 = scmp.eq.s32.totalorder %s210_s17, 0 }
   0xc   : > { %p224_p2 = scmp.eq.s32.totalorder %s1446_s13, 1  ;;  %p229_p3 = scmp.ne.s32.totalorder %s1353_s10, %s1349_s30 }
   0xd   : > { %p230_p4 = scmp.eq.s32.totalorder %s949_s14, 1  ;;  %p950_p7 = scmp.ge.s32.totalorder %s1361_s12, 1 }
   0xe   : > { %s1461_s18 = scalar_select %p211_p1, %s1357_s11, %s213_s16  }
   0xf   : > { %p1463_p5 = por %p224_p2, %p223_p0  ;;  %p1467_p6 = por %p230_p4, %p229_p3 }
  0x10   : > { %1749 = sst [smem:[#allocation18_spill]] %s1461_s18  ;;  %p263_p8 = scmp.lt.s32.totalorder %s1361_s12, 3 }
  0x11   : > { %s1750_s19 = scalar_select %p1463_p5, 1, 0 }
  0x12   : > { %s1751_s20 = scalar_select %p1467_p6, 1, 0 }
  0x13   : > { %p1738_p9 = scmp.eq.s32.totalorder %s1446_s13, 0  ;;  %p1474_p10 = pnand %p950_p7, %p263_p8 }
  0x14   : > { %1752 = sst [smem:[#allocation19_spill]] %s1751_s20  ;;  %s1363_s22 = smov [#allocation5]  }
  0x15   : > { %s1753_s21 = scalar_select %p1474_p10, 1, 0 }
  0x16   : > { %p1081_p11 = pneg %p1474_p10  ;;  %s291_s23 = sshll.u32 %s1363_s22, 4  ;;  %s1480_s23 = int_to_ptr.vmem [resolvable:$true] %s291_s23 }
  0x17   : > { %s1364_s25 = smov [#allocation2]   ;;  %s1365_s27 = smov [#allocation7]  }
  0x18   : > { %p1484_p12 = pnand %p1738_p9, %p1081_p11  ;;  %s275_s26 = sshll.u32 %s1364_s25, 4  ;;  %s1488_s26 = int_to_ptr.vmem [resolvable:$true] %s275_s26 }
  0x19   : > { %s1490_s28 = sshll.u32 %s1365_s27, 4  ;;  %s1175_s16 = scalar_lea.hbm %s1731_s3, 1024  ;;  %s308_s28 = int_to_ptr.vmem [resolvable:$true] %s1490_s28 }
  0x1a   : > { %p1176_p13 = scmp.ne.s32.totalorder %s1731_s3, %s1175_s16  ;;  %p1500_p0 = pneg %p1484_p12 }
  0x1b   : > { %p1182_p3 = scmp.lt.u32.totalorder %s1175_s16, %s1731_s3 }
  0x1c   : > { %p1178_p1 = pnand %p1500_p0, %p1176_p13 }
  0x1e   : > { %p1179_p2 = pneg %p1178_p1 }
  0x20   : > { %p1184_p4 = pnand %p1182_p3, %p1179_p2 }
  0x22   : > { %1187 = shalt.err (!%p1184_p4)
}
  0x23   : > { %s1188_s29 = scalar_lea.vmem %s1480_s23, 1024  ;;  %p1196_p9 = scmp.lt.s32.totalorder %s1480_s23, %s1480_s23 }
  0x24   : > { %p1189_p7 = scmp.ne.s32.totalorder %s1480_s23, %s1188_s29  ;;  %p1197_p6 = scmp.lt.s32.totalorder %s1188_s29, %s1188_s29 }
  0x26   : > { %p1191_p8 = pnand %p1189_p7, %p1500_p0  ;;  %p1198_p13 = por %p1197_p6, %p1196_p9 }
  0x28   : > { %p1192_p11 = pneg %p1191_p8 }
  0x2a   : > { %p1199_p1 = pnand %p1198_p13, %p1192_p11 }
  0x2c   : > { %1202 = shalt.err (!%p1199_p1)
}
  0x2d   : > { %s1366_s14 = smov 64   ;;  %s1367_s16 = smov 4  }
  0x2e   : > { %1087 = dma.hbm_to_vmem [thread:$0]  (!%p1484_p12), %s1731_s3, 1024, %s1480_s23, [#allocation6], %s1366_s14, %s1366_s14, %s1367_s16  }
  0x2f   : > { %s1203_s29 = scalar_lea.hbm %s1729_s1, 256 }
  0x30   : > { %p1204_p6 = scmp.ne.s32.totalorder %s1729_s1, %s1203_s29  ;;  %p1210_p3 = scmp.lt.u32.totalorder %s1203_s29, %s1729_s1 }
  0x32   : > { %p1206_p9 = pnand %p1204_p6, %p1500_p0 }
  0x34   : > { %p1207_p2 = pneg %p1206_p9 }
  0x36   : > { %p1212_p4 = pnand %p1210_p3, %p1207_p2 }
  0x38   : > { %1215 = shalt.err (!%p1212_p4)
}
  0x39   : > { %s1216_s23 = scalar_lea.vmem %s1488_s26, 256  ;;  %p1224_p13 = scmp.lt.s32.totalorder %s1488_s26, %s1488_s26 }
  0x3a   : > { %p1217_p7 = scmp.ne.s32.totalorder %s1488_s26, %s1216_s23  ;;  %p1225_p1 = scmp.lt.s32.totalorder %s1216_s23, %s1216_s23 }
  0x3c   : > { %p1219_p8 = pnand %p1217_p7, %p1500_p0  ;;  %p1226_p6 = por %p1225_p1, %p1224_p13 }
  0x3e   : > { %p1220_p11 = pneg %p1219_p8 }
  0x40   : > { %p1227_p9 = pnand %p1226_p6, %p1220_p11 }
  0x42   : > { %1230 = shalt.err (!%p1227_p9)
}
  0x43   : > { %1084 = dma.hbm_to_vmem [thread:$0]  (!%p1484_p12), %s1729_s1, 256, %s1488_s26, [#allocation3], %s1366_s14, %s1366_s14, %s1367_s16  }
  0x44   : > { %s1231_s17 = scalar_lea.hbm %s1733_s5, 1024 }
  0x45   : > { %p1232_p2 = scmp.ne.s32.totalorder %s1733_s5, %s1231_s17  ;;  %p1238_p7 = scmp.lt.u32.totalorder %s1231_s17, %s1733_s5 }
  0x47   : > { %p1234_p3 = pnand %p1232_p2, %p1500_p0 }
  0x49   : > { %p1235_p4 = pneg %p1234_p3 }
  0x4b   : > { %p1240_p8 = pnand %p1238_p7, %p1235_p4 }
  0x4d   : > { %1243 = shalt.err (!%p1240_p8)
}
  0x4e   : > { %s1244_s23 = scalar_lea.vmem %s308_s28, 1024  ;;  %p1252_p6 = scmp.lt.s32.totalorder %s308_s28, %s308_s28 }
  0x4f   : > { %p1245_p11 = scmp.ne.s32.totalorder %s308_s28, %s1244_s23  ;;  %p1253_p9 = scmp.lt.s32.totalorder %s1244_s23, %s1244_s23 }
  0x51   : > { %p1247_p13 = pnand %p1245_p11, %p1500_p0  ;;  %p1254_p5 = por %p1253_p9, %p1252_p6 }
  0x53   : > { %p1248_p1 = pneg %p1247_p13 }
  0x55   : > { %p1255_p10 = pnand %p1254_p5, %p1248_p1 }
  0x57   : > { %1258 = shalt.err (!%p1255_p10)
}
  0x58   : > { %1090 = dma.hbm_to_vmem [thread:$0]  (!%p1484_p12), %s1733_s5, 1024, %s308_s28, [#allocation6], %s1366_s14, %s1366_s14, %s1367_s16  }
  0x59   : > { %p1756_p2 = scmp.ne.s32.totalorder %s1753_s21, 0 }
  0x5a   : > { %p1757_p0 = scmp.eq.s32.totalorder (!%p1756_p2), %s1446_s13, 0 }
  0x5b   : > { %344 = sbr.rel (%p1756_p2) target bundleno = 1311 (0x51f), region = 52 }
  0x62   : > { %1332 = dma.done.wait (%p1757_p0), [#allocation3], 256   ;;  %p1758_p3 = pmov %p1757_p0 }
  0x63   : > { %p1759_p5 = pmov %p1757_p0 }
  0x64   : > { %1334 = vsyncadd (%p1758_p3), [#allocation3], 4294967040 }
  0x65   : > { %1336 = dma.done.wait (%p1759_p5), [#allocation6], 2048   ;;  %p1760_p10 = pmov %p1757_p0 }
  0x66   : > { %s960_s18 = sshll.u32 %s1446_s13, 1  ;;  %v1368_v0 = vmov 0.0   ;;  %vm1369_vm0 = vmmov 0   ;;  %v1149_v1 = vld [vmem:[#allocation2] sm:$0xff]   ;;  %v1150_v2 = vld [vmem:[#allocation2 + $0x8] sm:$0xff]   ;;  %v1151_v5 = vld [vmem:[#allocation5] sm:$0xff]   ;;  %v714_v45 = vlaneseq }
  0x67   : > { %1338 = vsyncadd (%p1760_p10), [#allocation6], 4294965248  ;;  %1015 = vmatprep.subr.bf16.mxu0 %v1368_v0  ;;  %1019 = vmatprep.mubr.msk.bf16.mxu0 %vm1369_vm0, %v1368_v0  ;;  %p398_p12 = scmp.lt.s32.totalorder %s960_s18, 3  ;;  %v1152_v7 = vld [vmem:[#allocation5 + $0x8] sm:$0xff]   ;;  %vm437_vm1 = vcmask 261120   ;;  %v1153_v8 = vld [vmem:[#allocation5 + $0x10] sm:$0xff]  }
  0x68   : > { %1023 = vmatprep.subr.bf16.mxu1 %v1368_v0  ;;  %1039 = vmatprep.mubr.msk.bf16.mxu1 %vm1369_vm0, %v1368_v0  ;;  %v1154_v9 = vld [vmem:[#allocation5 + $0x18] sm:$0xff]   ;;  %v1155_v10 = vld [vmem:[#allocation5 + $0x20] sm:$0xff]   ;;  %v1156_v11 = vld [vmem:[#allocation5 + $0x28] sm:$0xff]   ;;  %v1370_v32 = vmov 0   ;;  %s1627_s27 = sand.u32 1, %s1353_s10   ;;  %v1629_v46 = vand.u32 127, %v714_v45 }
  0x69   : > { %s1771_s18 = smov (!%p398_p12, %s960_s18), 3  ;;  %1016 = vmatpush3.bf16.msra.mxu0 %v1149_v1  ;;  %1024 = vmatpush3.bf16.msra.mxu1 %v1151_v5  ;;  %v1157_v12 = vld [vmem:[#allocation5 + $0x30] sm:$0xff]   ;;  %v1158_v13 = vld [vmem:[#allocation5 + $0x38] sm:$0xff]   ;;  %v1159_v14 = vld [vmem:[#allocation7] sm:$0xff]   ;;  %s959_s29 = sshll.u32 %s1627_s27, 4  ;;  %vm768_vm7 = vcmask 7168  }
  0x6a   : > { %s961_s21 = sshll.u32 %s1771_s18, 3  ;;  %1017 = vmatprep.subr.bf16.mxu0 %v1368_v0  ;;  %1025 = vmatprep.subr.bf16.mxu1 %v1368_v0  ;;  %v1160_v15 = vld [vmem:[#allocation7 + $0x8] sm:$0xff]   ;;  %v1161_v16 = vld [vmem:[#allocation7 + $0x10] sm:$0xff]   ;;  %v1162_v17 = vld [vmem:[#allocation7 + $0x18] sm:$0xff]   ;;  %vm716_vm2 = vcmp.lt.s32.totalorder %v1629_v46, 16  ;;  %s1636_s30 = scalar_lea.vmem [#allocation8], %s959_s29 }
  0x6b   : > { %s401_s14 = scalar_lea.vmem %s1728_s0, %s961_s21  ;;  %v1163_v18 = vld [vmem:[#allocation7 + $0x20] sm:$0xff]   ;;  %v1164_v19 = vld [vmem:[#allocation7 + $0x28] sm:$0xff]   ;;  %v964_v20 = vld [vmem:[%s1730_s2] ss:$0 sm:$0xff]  ;;  %s407_s17 = scalar_lea.vmem %s1735_s7, %s961_s21  ;;  %1147 = vset.pattern.permute.xlu1 %v1370_v32  ;;  %1148 = vset.pattern.permute.xlu0 %v1370_v32 }
  0x6c   : > { %v411_v3 = vld [vmem:[%s401_s14] sm:$0xff]  ;;  %v412_v4 = vld [vmem:[%s401_s14 + $0x8] sm:$0xff]  ;;  %s986_s18 = sshll.u32 %s1446_s13, 4  ;;  %s803_s21 = sshll.u32 %s1636_s30, 4  ;;  %s1646_s21 = int_to_ptr.vmem [resolvable:$true] %s803_s21 }
  0x6d   : > { %v413_v6 = vpack.c.bf16 %v412_v4, %v411_v3  ;;  %1018 = vmatpush3.bf16.msra.mxu0 %v1150_v2  ;;  %1026 = vmatpush3.bf16.msra.mxu1 %v1152_v7  ;;  %v1165_v30 = vld [vmem:[#allocation7 + $0x30] sm:$0xff]   ;;  %v1166_v31 = vld [vmem:[#allocation7 + $0x38] sm:$0xff]   ;;  %v761_v7 = vstv %s986_s18  ;;  %s993_s24 = sshll.u32 %s1446_s13, 8  ;;  %s786_s11 = scalar_lea.sflag [#allocation4], %s1627_s27 }
  0x6e   : > { %1043 = vmatprep.subr.bf16.mxu0 %v1368_v0  ;;  %1027 = vmatprep.subr.bf16.mxu1 %v1368_v0  ;;  %v739_v33 = vld [vmem:[%s407_s17] sm:$0xff]  ;;  %v740_v34 = vld [vmem:[%s407_s17 + $0x8] sm:$0xff]  ;;  %s1652_s16 = scalar_lea.hbm %s1736_s8, %s993_s24  ;;  %s1259_s15 = scalar_lea.vmem %s1646_s21, 256 }
  0x6f   : > { %742 = vperm.xlu1 %1147, %v739_v33   ;;  %v968_v35 = vld [vmem:[%s1732_s4] ss:$0 sm:$0xff]  ;;  %p1260_p4 = scmp.ne.s32.totalorder %s1646_s21, %s1259_s15  ;;  %p1761_p7 = scmp.ne.s32.totalorder %s1750_s19, 0 }
  0x70   : > { %1020 = vmatmul.mubr.msk.bf16.vlgmr.msra.gmra.mrb[0].mxu0 %vm437_vm1, %v413_v6  ;;  %v977_v47 = vld [vmem:[%s1734_s6] ss:$0 sm:$0xff]  ;;  %v759_v6 = vshrl.u32 %v714_v45, 7  ;;  %s1371_s20 = smov [#allocation8]  }
  0x71   : > { %1059 = vmatprep.mubr.msk.bf16.mxu0 %vm1369_vm0, %v1368_v0  ;;  %1028 = vmatpush3.bf16.msra.mxu1 %v1153_v8  ;;  %p1261_p8 = pnand %p1260_p4, %p1761_p7  ;;  %s1263_s17 = sshll.u32 %s1371_s20, 4  ;;  %s1264_s17 = int_to_ptr.vmem [resolvable:$false] %s1263_s17 }
  0x72   : > { %1029 = vmatprep.subr.bf16.mxu1 %v1368_v0  ;;  %1044 = vmatpush3.bf16.msra.mxu0 %v1159_v14  ;;  %s1265_s22 = scalar_lea.vmem %s1264_s17, 512  ;;  %p1266_p13 = scmp.lt.s32.totalorder %s1646_s21, %s1264_s17 }
  0x73   : > { %1045 = vmatprep.subr.bf16.mxu0 %v1368_v0  ;;  %745 = vperm.xlu1 %1147, %v740_v34   ;;  %p1262_p11 = pneg %p1261_p8  ;;  %p1267_p1 = scmp.lt.s32.totalorder %s1265_s22, %s1259_s15 }
  0x75   : > { %1030 = vmatpush3.bf16.msra.mxu1 %v1154_v9  ;;  %v760_v9 = vadd.s32 8, %v759_v6  ;;  %p1268_p6 = por %p1267_p1, %p1266_p13 }
  0x76   : > { %1031 = vmatprep.subr.bf16.mxu1 %v1368_v0  ;;  %1046 = vmatpush3.bf16.msra.mxu0 %v1160_v15 }
  0x77   : > { %1047 = vmatprep.subr.bf16.mxu0 %v1368_v0  ;;  %v763_v15 = vadd.s32 %v761_v7, %v760_v9  ;;  %p1269_p9 = pnand %p1268_p6, %p1262_p11 }
  0x79   : > { %1032 = vmatpush3.bf16.msra.mxu1 %v1155_v10  ;;  %vm765_vm6 = vcmp.lt.s32.totalorder %v763_v15, 24 }
  0x7a   : > { %1033 = vmatprep.subr.bf16.mxu1 %v1368_v0  ;;  %1048 = vmatpush3.bf16.msra.mxu0 %v1161_v16 }
  0x7b   : > { %1049 = vmatprep.subr.bf16.mxu0 %v1368_v0 }
  0x7d   : > { %1034 = vmatpush3.bf16.msra.mxu1 %v1156_v11  ;;  %v762_v11 = vadd.s32 %v761_v7, %v759_v6 }
  0x7e   : > { %1035 = vmatprep.subr.bf16.mxu1 %v1368_v0  ;;  %1050 = vmatpush3.bf16.msra.mxu0 %v1162_v17 }
  0x7f   : > { %1051 = vmatprep.subr.bf16.mxu0 %v1368_v0  ;;  %vm764_vm5 = vcmp.lt.s32.totalorder %v762_v11, 24 }
  0x81   : > { %1036 = vmatpush3.bf16.msra.mxu1 %v1157_v12 }
  0x82   : > { %1037 = vmatprep.subr.bf16.mxu1 %v1368_v0  ;;  %1052 = vmatpush3.bf16.msra.mxu0 %v1163_v18 }
  0x83   : > { %1053 = vmatprep.subr.bf16.mxu0 %v1368_v0 }
  0x85   : > { %1038 = vmatpush3.bf16.msra.mxu1 %v1158_v13 }
  0x86   : > { %1054 = vmatpush3.bf16.msra.mxu0 %v1164_v19 }
  0x87   : > { %1055 = vmatprep.subr.bf16.mxu0 %v1368_v0 }
  0x8a   : > { %1056 = vmatpush3.bf16.msra.mxu0 %v1165_v30 }
  0x8b   : > { %1057 = vmatprep.subr.bf16.mxu0 %v1368_v0 }
  0x8e   : > { %1058 = vmatpush3.bf16.msra.mxu0 %v1166_v31 }
  0xee   : > { %v743_v62 = vpop.permute.xlu1 %742 }
  0xef   : > { %vm747_vm3 = vcmp.eq.s32.totalorder %v1629_v46, %v743_v62 }
  0xf2   : > { %v746_v0 = vpop.permute.xlu1 %745 }
  0xf3   : > { %vm748_vm4 = vcmp.eq.s32.totalorder %v1629_v46, %v746_v0 }
 0x143   : > { %v475_v21 = vpop.f32.mrb[0].mxu0 }
 0x144   : > { %v476_v22 = vadd.f32 %v964_v20, %v475_v21  ;;  %v1021_v23 = vpop.f32.mrb[1].mxu0 }
 0x145   : > { %v478_v24 = vpop.f32.mrb[2].mxu0 }
 0x146   : > { %v479_v25 = vadd.f32 %v964_v20, %v478_v24  ;;  %v1022_v26 = vpop.f32.mrb[3].mxu0  ;;  %v482_v27 = vmax.f32 %v476_v22, 0.0 }
 0x148   : > { %v483_v28 = vmax.f32 %v479_v25, 0.0 }
 0x14a   : > { %v484_v29 = vpack.c.bf16 %v483_v28, %v482_v27 }
 0x14c   : > { %1040 = vmatmul.mubr.bf16.vlgmr.msra.gmra.mrb[0].mxu1 %v484_v29 }
 0x21f   : > { %v590_v36 = vpop.f32.mrb[0].mxu1 }
 0x220   : > { %v591_v37 = vadd.f32 %v968_v35, %v590_v36  ;;  %v1041_v38 = vpop.f32.mrb[1].mxu1 }
 0x221   : > { %v593_v39 = vpop.f32.mrb[2].mxu1 }
 0x222   : > { %v594_v40 = vadd.f32 %v968_v35, %v593_v39  ;;  %v1042_v41 = vpop.f32.mrb[3].mxu1  ;;  %v597_v42 = vmax.f32 %v591_v37, 0.0 }
 0x224   : > { %v598_v43 = vmax.f32 %v594_v40, 0.0 }
 0x226   : > { %v599_v44 = vpack.c.bf16 %v598_v43, %v597_v42 }
 0x228   : > { %1060 = vmatmul.mubr.bf16.vlgmr.msra.gmra.mrb[4].mxu0 %v599_v44 }
 0x2fb   : > { %v705_v48 = vpop.f32.mrb[4].mxu0 }
 0x2fc   : > { %v706_v49 = vadd.f32 %v977_v47, %v705_v48  ;;  %v1061_v50 = vpop.f32.mrb[5].mxu0 }
 0x2fd   : > { %v708_v51 = vpop.f32.mrb[6].mxu0 }
 0x2fe   : > { %712 = vst [vmem:[%s1636_s30] sm:$0xff] %v706_v49  ;;  %v709_v52 = vadd.f32 %v977_v47, %v708_v51  ;;  %v1062_v53 = vpop.f32.mrb[7].mxu0  ;;  %v717_v54 = vsel %vm716_vm2, %v706_v49, -1e+30  ;;  %v749_v2 = vsel %vm747_vm3, %v706_v49, 0.0 }
 0x2ff   : > { %719 = vmax.xlane.f32.xlu0 %v717_v54 }
 0x300   : > { %713 = vst [vmem:[%s1636_s30 + $0x8] sm:$0xff] %v709_v52  ;;  %v718_v55 = vsel %vm716_vm2, %v709_v52, -1e+30  ;;  %v750_v3 = vsel %vm748_vm4, %v709_v52, 0.0 }
 0x303   : > { %721 = vmax.xlane.f32.xlu0 %v718_v55 }
 0x38c   : > { %v720_v56 = vpop.xlane.xlu0 %719 }
 0x38d   : > { %v723_v57 = vsub.f32 %v717_v54, %v720_v56 }
 0x38f   : > { %v725_v58 = vmul.f32 1.442695, %v723_v57 }
 0x390   : > { %v722_v59 = vpop.xlane.xlu0 %721 }
 0x391   : > { %1167 = vpow2.f32 %v725_v58  ;;  %v724_v60 = vsub.f32 %v718_v55, %v722_v59 }
 0x393   : > { %v727_v61 = vmul.f32 1.442695, %v724_v60 }
 0x395   : > { %1169 = vpow2.f32 %v727_v61 }
 0x39b   : > { %v1168_v63 = vpop.eup %1167 }
 0x39c   : > { %729 = vadd.xlane.f32.xlu0 %v1168_v63 }
 0x39f   : > { %v1170_v1 = vpop.eup %1169 }
 0x3a0   : > { %751 = vadd.xlane.f32.xlu0 %v749_v2  ;;  %731 = vadd.xlane.f32.xlu1 %v1170_v1 }
 0x3a4   : > { %753 = vadd.xlane.f32.xlu0 %v750_v3 }
 0x429   : > { %v730_v4 = vpop.xlane.xlu0 %729 }
 0x42a   : > { %1171 = vlog2.f32 %v730_v4 }
 0x42d   : > { %v732_v5 = vpop.xlane.xlu1 %731  ;;  %v752_v12 = vpop.xlane.xlu0 %751 }
 0x42e   : > { %1173 = vlog2.f32 %v732_v5 }
 0x431   : > { %v754_v19 = vpop.xlane.xlu0 %753 }
 0x434   : > { %v1172_v8 = vpop.eup %1171 }
 0x435   : > { %v734_v10 = vmul.f32 0.6931472, %v1172_v8 }
 0x437   : > { %v737_v13 = vadd.f32 %v734_v10, %v720_v56 }
 0x438   : > { %v1174_v14 = vpop.eup %1173 }
 0x439   : > { %v736_v16 = vmul.f32 0.6931472, %v1174_v14  ;;  %v755_v17 = vsub.f32 %v737_v13, %v752_v12 }
 0x43b   : > { %v738_v18 = vadd.f32 %v736_v16, %v722_v59  ;;  %v766_v20 = vsel %vm764_vm5, %v755_v17, 0.0 }
 0x43c   : > { %v769_v23 = vsel %vm768_vm7, %v766_v20, 0.0 }
 0x43d   : > { %v756_v21 = vsub.f32 %v738_v18, %v754_v19 }
 0x43f   : > { %v767_v22 = vsel %vm765_vm6, %v756_v21, 0.0 }
 0x440   : > { %v770_v24 = vsel %vm768_vm7, %v767_v22, 0.0 }
 0x441   : > { %v771_v25 = vadd.f32 %v770_v24, %v769_v23 }
 0x443   : > { %772 = vadd.xlane.f32.xlu0 %v771_v25 }
 0x444   : > { %1272 = shalt.err (!%p1269_p9)
}
 0x445   : > { %s1273_s25 = scalar_lea.hbm %s1652_s16, 256  ;;  %s1277_s26 = scalar_lea.hbm %s1736_s8, 512 }
 0x446   : > { %p1274_p2 = scmp.ne.s32.totalorder %s1652_s16, %s1273_s25  ;;  %p1278_p5 = scmp.lt.u32.totalorder %s1652_s16, %s1736_s8 }
 0x447   : > { %p1279_p10 = scmp.lt.u32.totalorder %s1277_s26, %s1273_s25  ;;  %p1281_p4 = scmp.lt.u32.totalorder %s1273_s25, %s1652_s16 }
 0x448   : > { %p1275_p0 = pnand %p1274_p2, %p1761_p7 }
 0x449   : > { %p1280_p12 = por %p1279_p10, %p1278_p5 }
 0x44a   : > { %p1276_p3 = pneg %p1275_p0 }
 0x44b   : > { %p1282_p8 = por %p1281_p4, %p1280_p12 }
 0x44d   : > { %p1283_p11 = pnand %p1282_p8, %p1276_p3 }
 0x44f   : > { %1286 = shalt.err (!%p1283_p11)
}
 0x450   : > { %s1372_s28 = smov 128   ;;  %s1373_s14 = smov 8   ;;  %vm781_vm8 = vcmp.eq.s32.totalorder %v1629_v46, 0 }
 0x451   : > { %1077 = dma.vmem_to_hbm [thread:$0]  (%p1761_p7), %s1646_s21, 256, %s1652_s16, %s786_s11, %s1372_s28, %s1372_s28, %s1373_s14  }
 0x452   : > { %s396_s15 = scalar_lea.vmem [#allocation9], %s1627_s27  ;;  %s1685_s21 = scalar_lea.hbm %s1737_s9, %s986_s18 }
 0x453   : > { %s819_s20 = sshll.u32 %s396_s15, 4  ;;  %s791_s16 = scalar_lea.sflag [#allocation10], %s1627_s27  ;;  %s1687_s20 = int_to_ptr.vmem [resolvable:$true] %s819_s20 }
 0x454   : > { %s1287_s11 = scalar_lea.vmem %s1687_s20, 16  ;;  %s1374_s29 = smov [#allocation9]  }
 0x455   : > { %p1288_p13 = scmp.ne.s32.totalorder %s1687_s20, %s1287_s11  ;;  %s1291_s13 = sshll.u32 %s1374_s29, 4  ;;  %s1292_s13 = int_to_ptr.vmem [resolvable:$false] %s1291_s13 }
 0x456   : > { %s1293_s23 = scalar_lea.vmem %s1292_s13, 32  ;;  %p1294_p9 = scmp.lt.s32.totalorder %s1687_s20, %s1292_s13 }
 0x457   : > { %p1289_p1 = pnand %p1288_p13, %p1761_p7  ;;  %p1295_p2 = scmp.lt.s32.totalorder %s1293_s23, %s1287_s11 }
 0x459   : > { %p1290_p6 = pneg %p1289_p1  ;;  %p1296_p0 = por %p1295_p2, %p1294_p9 }
 0x45b   : > { %p1297_p3 = pnand %p1296_p0, %p1290_p6 }
 0x4d0   : > { %v773_v26 = vpop.xlane.xlu0 %772 }
 0x4d1   : > { %v774_v27 = vrot.slane %v773_v26, 4 }
 0x4d3   : > { %v775_v28 = vadd.f32 %v774_v27, %v773_v26 }
 0x4d5   : > { %v776_v29 = vrot.slane %v775_v28, 2 }
 0x4d7   : > { %v777_v30 = vadd.f32 %v776_v29, %v775_v28 }
 0x4d9   : > { %v778_v31 = vrot.slane %v777_v30, 1 }
 0x4db   : > { %v779_v32 = vadd.f32 %v778_v31, %v777_v30 }
 0x4dd   : > { %1063 = vpush %v779_v32 }
 0x50e   : > { %s1064_s17 = spop %1063 }
 0x50f   : > { %v782_v33 = vstv %s1064_s17 }
 0x510   : > { %v783_v34 = vsel %vm781_vm8, %v782_v33, 0.0 }
 0x511   : > { %784 = vst [vmem:[%s396_s15] sm:$0x1] %v783_v34 }
 0x512   : > { %1300 = shalt.err (!%p1297_p3)
}
 0x513   : > { %s1301_s27 = scalar_lea.hbm %s1685_s21, 16  ;;  %s1305_s30 = scalar_lea.hbm %s1737_s9, 32 }
 0x514   : > { %p1302_p5 = scmp.ne.s32.totalorder %s1685_s21, %s1301_s27  ;;  %p1306_p4 = scmp.lt.u32.totalorder %s1685_s21, %s1737_s9 }
 0x515   : > { %p1307_p8 = scmp.lt.u32.totalorder %s1305_s30, %s1301_s27  ;;  %p1309_p13 = scmp.lt.u32.totalorder %s1301_s27, %s1685_s21 }
 0x516   : > { %p1303_p10 = pnand %p1302_p5, %p1761_p7 }
 0x517   : > { %p1308_p11 = por %p1307_p8, %p1306_p4 }
 0x518   : > { %p1304_p12 = pneg %p1303_p10 }
 0x519   : > { %p1310_p1 = por %p1309_p13, %p1308_p11 }
 0x51b   : > { %p1311_p6 = pnand %p1310_p1, %p1304_p12 }
 0x51d   : > { %1314 = shalt.err (!%p1311_p6)
}
 0x51e   : > { %1078 = dma.vmem_to_hbm [thread:$0]  (%p1761_p7), %s1687_s20, 16, %s1685_s21, %s791_s16  }
 0x51f PF: > { %s1762_s14 = sld [smem:[#allocation15_spill]]  ;;  %s1763_s15 = sld [smem:[#allocation19_spill]] }
 0x520   : > { %p1104_p9 = scmp.ge.s32.totalorder %s1361_s12, 2 }
 0x525   : > { %s831_s17 = sand.u32 1, %s1762_s14   ;;  %p1764_p2 = scmp.ne.s32.totalorder %s1763_s15, 0 }
 0x526   : > { %s832_s22 = scalar_lea.sflag [#allocation4], %s831_s17 }
 0x527   : > { %p1092_p0 = pnand %p1104_p9, %p1764_p2 }
 0x529   : > { %1340 = dma.done.wait (!%p1092_p0), %s832_s22, 256  }
 0x52a   : > { %1342 = vsyncadd (!%p1092_p0), %s832_s22, 4294967040  ;;  %s841_s25 = scalar_lea.sflag [#allocation10], %s831_s17 }
 0x52b   : > { %1344 = dma.done.wait (!%p1092_p0), %s841_s25, 16  }
 0x52c   : > { %1346 = vsyncadd (!%p1092_p0), %s841_s25, 4294967280  ;;  %s1765_s12 = sld [smem:[#allocation17_spill]]  ;;  %s1766_s19 = sld [smem:[#allocation16_spill]] }
 0x52d   : > { %s1767_s11 = sld [smem:[#allocation18_spill]]  ;;  %s1768_s30 = smov %s1353_s10 }
 0x532   : > { %p25_p7 = scmp.ge.s32.totalorder %s1765_s12, 4   ;;  %s1769_s10 = smov %s1766_s19 }
 0x534   :  { %27 = sbr.rel (!%p25_p7) target bundleno = 7 (0x7), region = 120 }
 0x53b   :  { %845 = vsyncpa [#allocation3], 1 }
 0x53c   :  { %847 = vsyncpa [#allocation3 + $0x1], 1 }
 0x53d   :  { %848 = vsyncpa [#allocation6], 1 }
 0x53e   :  { %849 = vsyncpa [#allocation4], 1 }
 0x53f   :  { %851 = vsyncpa [#allocation4 + $0x1], 1 }
 0x540   :  { %852 = vsyncpa [#allocation10], 1 }
 0x541   :  { %854 = vsyncpa [#allocation10 + $0x1], 1 }

</bundles_post_ra>
